<compile_context>
chip_gen: v6e
topology: v6e:2x2x1
jax: 0.10.0
libtpu: 0.0.40
codegen_flags: <defaults>
</compile_context>

<pallas_src>
import functools
import numpy as np

import jax
import jax.numpy as jnp
from jax.experimental import pallas as pl
from jax.experimental.pallas import tpu as pltpu


# ----------------------------------------------------------------------------
# In-kernel math helpers
# ----------------------------------------------------------------------------
def _erf_f32(x):
    # Abramowitz & Stegun 7.1.26 rational approximation, |err| <= 1.5e-7
    # (effectively exact at f32; matches PyTorch's erf-based GELU).
    ax = jnp.abs(x)
    t = 1.0 / (1.0 + 0.3275911 * ax)
    poly = t * (0.254829592 + t * (-0.284496736 + t * (1.421413741
              + t * (-1.453152027 + t * 1.061405429))))
    y = 1.0 - poly * jnp.exp(-ax * ax)
    return jnp.where(x >= 0.0, y, -y)


def _gelu_exact(x):
    # PyTorch F.gelu default (erf-based, not tanh approximation)
    return 0.5 * x * (1.0 + _erf_f32(x * 0.7071067811865475))


# ----------------------------------------------------------------------------
# Fused encoder kernel: adapter+PE -> L x ReZero layer -> final LayerNorm
# grid = (batch_tiles, layer); activation carried in VMEM scratch across layers
# ----------------------------------------------------------------------------
def _fused_encoder_kernel(x_ref, w_ad_ref, bpe_ref,
                          wqkv_ref, wo_ref, w1_ref, w2_ref,
                          bqkv_ref, bo2_ref, b1_ref,
                          rw_ref, ln_ref,
                          o_ref, act_ref, *, nhead, eps):
    layer = pl.program_id(1)
    num_layers = pl.num_programs(1)

    Bt, S, Cin = x_ref.shape
    D = w_ad_ref.shape[1]
    hd = D // nhead
    M = Bt * S

    # ---- channel adapter + (adapter bias + positional encoding): layer 0 only
    @pl.when(layer == 0)
    def _():
        x = x_ref[...].reshape(M, Cin).astype(w_ad_ref.dtype)
        h = jnp.dot(x, w_ad_ref[...], preferred_element_type=jnp.float32)
        h = h.reshape(Bt, S, D) + bpe_ref[...][None]          # broadcast over Bt
        act_ref[...] = h.reshape(M, D)

    src = act_ref[...]                          # (M, D) f32 activation carry
    cdt = wqkv_ref.dtype                        # operand dtype (f32 or bf16)
    rw = rw_ref[layer]                          # ReZero resweight (SMEM scalar)

    # ---- multi-head self-attention ------------------------------------------
    # Fused QKV: one lane-dense (M, D) @ (D, 3D) matmul; softmax scale
    # 1/sqrt(hd) pre-folded into the Q columns / Q bias on the host.
    qkv = jnp.dot(src.astype(cdt), wqkv_ref[0],
                  preferred_element_type=jnp.float32)
    qkv = (qkv + bqkv_ref[0]).astype(cdt)                       # (M, 3D)

    def split_heads(base):
        # lane slab of qkv starting at `base` -> (Bt*H, S, hd)
        parts = [qkv[:, base + h * hd: base + (h + 1) * hd].reshape(Bt, S, hd)
                 for h in range(nhead)]
        return jnp.stack(parts, axis=1).reshape(Bt * nhead, S, hd)

    qh = split_heads(0)
    kh = split_heads(D)
    vh = split_heads(2 * D)

    s = jnp.einsum('gqe,gke->gqk', qh, kh,
                   preferred_element_type=jnp.float32)          # (Bt*H, S, S)
    s = s - jnp.max(s, axis=-1, keepdims=True)
    p = jnp.exp(s)
    denom = jnp.sum(p, axis=-1, keepdims=True)
    r = pl.reciprocal(denom, approx=True)                       # EUP slot
    r = r * (2.0 - denom * r)                                   # Newton step -> exact
    p = p * r

    ctx = jnp.einsum('gqk,gke->gqe', p.astype(cdt), vh,
                     preferred_element_type=jnp.float32)        # (Bt*H, S, hd)

    # Head merge -> single lane-dense (M, D) @ (D, D) output projection.
    ctx = ctx.reshape(Bt, nhead, S, hd)
    ctx = jnp.concatenate([ctx[:, h] for h in range(nhead)], axis=-1)
    ctx = ctx.reshape(M, D).astype(cdt)
    attn = jnp.dot(ctx, wo_ref[0],
                   preferred_element_type=jnp.float32) + bo2_ref[0, 0:1]

    src = src + rw * attn                                        # residual #1

    # ---- feed-forward (erf GELU, matching PyTorch default) ------------------
    h1 = jnp.dot(src.astype(cdt), w1_ref[0],
                 preferred_element_type=jnp.float32) + b1_ref[0]
    h1 = _gelu_exact(h1)
    ffn = jnp.dot(h1.astype(cdt), w2_ref[0],
                  preferred_element_type=jnp.float32) + bo2_ref[0, 1:2]
    src = src + rw * ffn                                         # residual #2

    act_ref[...] = src

    # ---- final LayerNorm: last layer step only -------------------------------
    @pl.when(layer == num_layers - 1)
    def _():
        mean = jnp.mean(src, axis=-1, keepdims=True)
        xc = src - mean
        var = jnp.mean(xc * xc, axis=-1, keepdims=True)
        inv = jax.lax.rsqrt(var + eps)
        y = xc * inv * ln_ref[0:1] + ln_ref[1:2]
        o_ref[...] = y.reshape(Bt, S, D).astype(o_ref.dtype)


# ----------------------------------------------------------------------------
# Wrapper: single pallas_call for the whole forward
# ----------------------------------------------------------------------------
def _vmem_limit_bytes():
    # Generation-aware VMEM budget (128 MiB on v5e/v6e, 64 MiB on v7x).
    try:
        cap = int(pltpu.get_tpu_info().vmem_capacity_bytes)
    except Exception:
        cap = 64 * 1024 * 1024
    return min(cap * 3 // 4, 96 * 1024 * 1024)


def _pick_batch_tile(B, S):
    # Fold batch into the matmul M dim to amortize per-layer weight DMA, but
    # keep >= 2 parallel grid tiles when possible (dual-TensorCore v7x).
    bt = 1
    while (bt < B and B % (bt * 2) == 0 and B // (bt * 2) >= 2
           and (bt * 2) * S <= 1024):
        bt *= 2
    return bt


def htr_transformer_encoder(x, adapter_w, bias_pe, packed, ln, *, nhead,
                            eps=1e-5, batch_tile=None,
                            src_key_padding_mask=None):
    # TODO(synk): src_key_padding_mask not supported (forward default is None).
    B, S, Cin = x.shape
    D = adapter_w.shape[1]
    assert D % nhead == 0, "d_model must be divisible by nhead"
    L = packed["wqkv"].shape[0]
    F = packed["w1"].shape[2]

    Bt = batch_tile if batch_tile is not None else _pick_batch_tile(B, S)
    assert B % Bt == 0

    kernel = functools.partial(_fused_encoder_kernel, nhead=nhead, eps=eps)

    layer3 = lambda b, l: (l, 0, 0)   # stacked per-layer tensors
    const2 = lambda b, l: (0, 0)      # layer/batch-invariant params

    return pl.pallas_call(
        kernel,
        out_shape=jax.ShapeDtypeStruct((B, S, D), x.dtype),
        grid=(B // Bt, L),
        in_specs=[
            pl.BlockSpec((Bt, S, Cin), lambda b, l: (b, 0, 0)),    # x
            pl.BlockSpec((Cin, D), const2),                        # adapter weight
            pl.BlockSpec((S, D), const2),                          # adapter bias + PE
            pl.BlockSpec((1, D, 3 * D), layer3),                   # wqkv (Q pre-scaled)
            pl.BlockSpec((1, D, D), layer3),                       # wo
            pl.BlockSpec((1, D, F), layer3),                       # w1
            pl.BlockSpec((1, F, D), layer3),                       # w2
            pl.BlockSpec((1, 1, 3 * D), layer3),                   # bqkv (Q pre-scaled)
            pl.BlockSpec((1, 2, D), layer3),                       # [bo; b2]
            pl.BlockSpec((1, 1, F), layer3),                       # b1
            pl.BlockSpec(memory_space=pltpu.MemorySpace.SMEM),     # rw (L,) scalars
            pl.BlockSpec((2, D), const2),                          # [ln_gamma; ln_beta]
        ],
        out_specs=pl.BlockSpec((Bt, S, D), lambda b, l: (b, 0, 0)),
        scratch_shapes=[pltpu.VMEM((Bt * S, D), jnp.float32)],     # activation carry
        compiler_params=pltpu.CompilerParams(
            dimension_semantics=("parallel", "arbitrary"),
            vmem_limit_bytes=_vmem_limit_bytes()),
    )(x, adapter_w, bias_pe,
      packed["wqkv"], packed["wo"], packed["w1"], packed["w2"],
      packed["bqkv"], packed["bo2"], packed["b1"],
      packed["rw"], ln)


# ----------------------------------------------------------------------------
# Host-side parameter packing (layer stacking, scale folding, bias fusion)
# ----------------------------------------------------------------------------
def pack_layer_params(layers, d_model, nhead, param_dtype=jnp.float32):
    assert d_model % nhead == 0, "d_model must be divisible by nhead"
    D = d_model
    hd = D // nhead
    scale = 1.0 / float(np.sqrt(hd))
    # fold 1/sqrt(hd) softmax scale into the Q third of wqkv / bqkv
    col_scale = jnp.concatenate([jnp.full((D,), scale, jnp.float32),
                                 jnp.ones((2 * D,), jnp.float32)])

    keys = ("wqkv", "bqkv", "wo", "bo2", "w1", "b1", "w2", "rw")
    acc = {k: [] for k in keys}
    for p in layers:
        acc["wqkv"].append((p["wqkv"] * col_scale[None, :]).astype(param_dtype))
        acc["bqkv"].append((p["bqkv"] * col_scale[None, :]).astype(jnp.float32))
        acc["wo"].append(p["wo"].astype(param_dtype))
        acc["bo2"].append(jnp.concatenate([p["bo"], p["b2"]],
                                          axis=0).astype(jnp.float32))
        acc["w1"].append(p["w1"].astype(param_dtype))
        acc["b1"].append(p["b1"].astype(jnp.float32))
        acc["w2"].append(p["w2"].astype(param_dtype))
        acc["rw"].append(p["rw"][0].astype(jnp.float32))
    return {k: jnp.stack(v, axis=0) for k, v in acc.items()}


# ----------------------------------------------------------------------------
# Positional encoding constant (positional_encodings.PositionalEncoding1D)
# ----------------------------------------------------------------------------
def sinusoidal_pe_1d(seq_len, d_model):
    channels = int(np.ceil(d_model / 2) * 2)
    inv_freq = 1.0 / (10000.0 ** (np.arange(0, channels, 2, dtype=np.float64) / channels))
    pos = np.arange(seq_len, dtype=np.float64)
    sin_inp = pos[:, None] * inv_freq[None, :]
    emb = np.zeros((seq_len, channels), dtype=np.float32)
    emb[:, 0::2] = np.sin(sin_inp)   # interleaved sin/cos like get_emb()
    emb[:, 1::2] = np.cos(sin_inp)
    return jnp.asarray(emb[:, :d_model], dtype=jnp.float32)


# ----------------------------------------------------------------------------
# Pure-JAX reference (correctness sanity check)
# ----------------------------------------------------------------------------
def reference_forward(x, adapter_w, adapter_b, pe, layers, ln_g, ln_b, nhead):
    h = x @ adapter_w + adapter_b + pe[None]
    B, S, D = h.shape
    hd = D // nhead
    for p in layers:
        qkv = h @ p["wqkv"] + p["bqkv"]
        q, k, v = jnp.split(qkv, 3, axis=-1)
        split = lambda t: t.reshape(B, S, nhead, hd).transpose(0, 2, 1, 3)
        q, k, v = split(q), split(k), split(v)
        scores = jnp.einsum("bhqd,bhkd->bhqk", q, k) / np.sqrt(hd)
        attn = jax.nn.softmax(scores, axis=-1)
        o = jnp.einsum("bhqk,bhkd->bhqd", attn, v)
        o = o.transpose(0, 2, 1, 3).reshape(B, S, D) @ p["wo"] + p["bo"]
        h = h + p["rw"][0] * o
        f = jax.nn.gelu(h @ p["w1"] + p["b1"], approximate=False)
        f = f @ p["w2"] + p["b2"]
        h = h + p["rw"][0] * f
    mean = h.mean(-1, keepdims=True)
    var = ((h - mean) ** 2).mean(-1, keepdims=True)
    return (h - mean) / jnp.sqrt(var + 1e-5) * ln_g + ln_b


# ----------------------------------------------------------------------------
# Main
# ----------------------------------------------------------------------------
if __name__ == "__main__":
    B, S, Cin = 2, 8, 16
    d_model, nhead, num_layers, dff = 32, 8, 2, 64

    kit = iter(jax.random.split(jax.random.PRNGKey(0), 64))

    def nrm(shape, scale=0.05):
        return scale * jax.random.normal(next(kit), shape, dtype=jnp.float32)

    x = jax.random.normal(next(kit), (B, S, Cin), dtype=jnp.float32)

    adapter_w = nrm((Cin, d_model))          # nn.Linear(in_channels, d_model) (transposed)
    adapter_b = nrm((1, d_model))
    pe = sinusoidal_pe_1d(S, d_model)

    layers = []
    for _ in range(num_layers):
        layers.append(dict(
            wqkv=nrm((d_model, 3 * d_model)),   # MHA in_proj (q|k|v), transposed
            bqkv=nrm((1, 3 * d_model)),
            wo=nrm((d_model, d_model)),         # MHA out_proj, transposed
            bo=nrm((1, d_model)),
            w1=nrm((d_model, dff)),             # FFN linear1, transposed
            b1=nrm((1, dff)),
            w2=nrm((dff, d_model)),             # FFN linear2, transposed
            b2=nrm((1, d_model)),
            # ReZero resweight: PyTorch initializes it to 0 (which would reduce
            # the encoder to a LayerNorm of its input); use a non-zero value so
            # the attention/FFN path is exercised.  Real checkpoints pass the
            # trained value here.
            rw=jnp.full((1,), 0.25, dtype=jnp.float32),
        ))
    ln_g = jnp.ones((1, d_model), jnp.float32)   # final nn.LayerNorm weight
    ln_b = jnp.zeros((1, d_model), jnp.float32)  # final nn.LayerNorm bias

    # Host-side prep: QKV fusion + scale folding, bias consolidation,
    # layer stacking, and (adapter bias + PE) fusion.
    packed = pack_layer_params(layers, d_model, nhead, param_dtype=jnp.float32)
    bias_pe = pe + adapter_b                     # (S, D) single additive term
    ln = jnp.concatenate([ln_g, ln_b], axis=0)   # (2, D) [gamma; beta]

    out = htr_transformer_encoder(x, adapter_w, bias_pe, packed, ln,
                                  nhead=nhead)
    out = jax.block_until_ready(out)

    ref = reference_forward(x, adapter_w, adapter_b, pe, layers, ln_g, ln_b, nhead)
    err = float(jnp.max(jnp.abs(out - ref)))
    assert out.shape == (B, S, d_model)
    assert np.isfinite(err) and err < 3e-3, f"max abs err too large: {err}"

    print("KERNEL_OK")
</pallas_src>

<mosaic_0001>
module attributes {stable_mosaic.version = 11 : i64} {
  func.func @_fused_encoder_kernel(%arg0: i32, %arg1: i32, %arg2: memref<1x8x16xf32, #tpu.memory_space<vmem>>, %arg3: memref<16x32xf32, #tpu.memory_space<vmem>>, %arg4: memref<8x32xf32, #tpu.memory_space<vmem>>, %arg5: memref<1x32x96xf32, #tpu.memory_space<vmem>>, %arg6: memref<1x32x32xf32, #tpu.memory_space<vmem>>, %arg7: memref<1x32x64xf32, #tpu.memory_space<vmem>>, %arg8: memref<1x64x32xf32, #tpu.memory_space<vmem>>, %arg9: memref<1x1x96xf32, #tpu.memory_space<vmem>>, %arg10: memref<1x2x32xf32, #tpu.memory_space<vmem>>, %arg11: memref<1x1x64xf32, #tpu.memory_space<vmem>>, %arg12: memref<2xf32, #tpu.memory_space<smem>>, %arg13: memref<2x32xf32, #tpu.memory_space<vmem>>, %arg14: memref<1x8x32xf32, #tpu.memory_space<vmem>>, %arg15: memref<8x32xf32, #tpu.memory_space<vmem>>) attributes {dimension_semantics = [#tpu.dimension_semantics<parallel>, #tpu.dimension_semantics<arbitrary>], iteration_bounds = array<i64: 2, 2>, scalar_prefetch = 0 : i64, scratch_operands = 1 : i64, tpu.core_type = #tpu.core_type<tc>, window_params = [{transform_indices = @transform_0, window_bounds = array<i64: 1, 8, 16>}, {pipeline_mode = #tpu.pipeline_mode<synchronous>, transform_indices = @transform_1, window_bounds = array<i64: 16, 32>}, {pipeline_mode = #tpu.pipeline_mode<synchronous>, transform_indices = @transform_2, window_bounds = array<i64: 8, 32>}, {transform_indices = @transform_3, window_bounds = array<i64: 1, 32, 96>}, {transform_indices = @transform_4, window_bounds = array<i64: 1, 32, 32>}, {transform_indices = @transform_5, window_bounds = array<i64: 1, 32, 64>}, {transform_indices = @transform_6, window_bounds = array<i64: 1, 64, 32>}, {transform_indices = @transform_7, window_bounds = array<i64: 1, 1, 96>}, {transform_indices = @transform_8, window_bounds = array<i64: 1, 2, 32>}, {transform_indices = @transform_9, window_bounds = array<i64: 1, 1, 64>}, {transform_indices = @transform_10, window_bounds = array<i64: 2>}, {pipeline_mode = #tpu.pipeline_mode<synchronous>, transform_indices = @transform_11, window_bounds = array<i64: 2, 32>}, {transform_indices = @transform_12, window_bounds = array<i64: 1, 8, 32>}]} {
    %c0_i32 = arith.constant 0 : i32
    %0 = arith.cmpi eq, %arg1, %c0_i32 : i32
    %1 = arith.extui %0 : i1 to i32
    %c0_i32_0 = arith.constant 0 : i32
    %2 = arith.cmpi ne, %1, %c0_i32_0 : i32
    scf.if %2 {
      %c0_51 = arith.constant 0 : index
      %c0_52 = arith.constant 0 : index
      %c0_53 = arith.constant 0 : index
      %197 = vector.load %arg2[%c0_51, %c0_52, %c0_53] : memref<1x8x16xf32, #tpu.memory_space<vmem>>, vector<1x8x16xf32>
      %198 = vector.shape_cast %197 : vector<1x8x16xf32> to vector<8x16xf32>
      %c0_54 = arith.constant 0 : index
      %c0_55 = arith.constant 0 : index
      %199 = vector.load %arg3[%c0_54, %c0_55] : memref<16x32xf32, #tpu.memory_space<vmem>>, vector<16x32xf32>
      %cst_56 = arith.constant dense<0.000000e+00> : vector<8x32xf32>
      %200 = tpu.matmul %198, %199, %cst_56 {dimension_numbers = #tpu.dot_dimension_numbers<[1], [0], [0], [1], [0, 0, 1, 1], [], []>} : vector<8x16xf32>, vector<16x32xf32>, vector<8x32xf32> -> vector<8x32xf32>
      %201 = vector.shape_cast %200 : vector<8x32xf32> to vector<1x8x32xf32>
      %c0_57 = arith.constant 0 : index
      %c0_58 = arith.constant 0 : index
      %202 = vector.load %arg4[%c0_57, %c0_58] : memref<8x32xf32, #tpu.memory_space<vmem>>, vector<8x32xf32>
      %203 = vector.shape_cast %202 : vector<8x32xf32> to vector<1x8x32xf32>
      %204 = arith.addf %201, %203 : vector<1x8x32xf32>
      %205 = vector.shape_cast %204 : vector<1x8x32xf32> to vector<8x32xf32>
      %c0_59 = arith.constant 0 : index
      %c0_60 = arith.constant 0 : index
      %206 = vector.load %arg15[%c0_59, %c0_60] : memref<8x32xf32, #tpu.memory_space<vmem>>, vector<8x32xf32>
      tpu.vector_store %arg15[%c0_59, %c0_60], %205 {strides = array<i32>} : memref<8x32xf32, #tpu.memory_space<vmem>>, vector<8x32xf32>,
    } else {
    }
    %c0 = arith.constant 0 : index
    %c0_1 = arith.constant 0 : index
    %3 = vector.load %arg15[%c0, %c0_1] : memref<8x32xf32, #tpu.memory_space<vmem>>, vector<8x32xf32>
    %4 = arith.index_cast %arg1 : i32 to index
    %5 = memref.load %arg12[%4] : memref<2xf32, #tpu.memory_space<smem>>
    %c0_2 = arith.constant 0 : index
    %c0_3 = arith.constant 0 : index
    %c0_4 = arith.constant 0 : index
    %6 = vector.load %arg5[%c0_2, %c0_3, %c0_4] : memref<1x32x96xf32, #tpu.memory_space<vmem>>, vector<1x32x96xf32>
    %7 = vector.shape_cast %6 : vector<1x32x96xf32> to vector<32x96xf32>
    %cst = arith.constant dense<0.000000e+00> : vector<8x96xf32>
    %8 = tpu.matmul %3, %7, %cst {dimension_numbers = #tpu.dot_dimension_numbers<[1], [0], [0], [1], [0, 0, 1, 1], [], []>} : vector<8x32xf32>, vector<32x96xf32>, vector<8x96xf32> -> vector<8x96xf32>
    %c0_5 = arith.constant 0 : index
    %c0_6 = arith.constant 0 : index
    %c0_7 = arith.constant 0 : index
    %9 = vector.load %arg9[%c0_5, %c0_6, %c0_7] : memref<1x1x96xf32, #tpu.memory_space<vmem>>, vector<1x1x96xf32>
    %10 = vector.shape_cast %9 : vector<1x1x96xf32> to vector<1x96xf32>
    %11 = vector.broadcast %10 : vector<1x96xf32> to vector<8x96xf32>
    %12 = arith.addf %8, %11 : vector<8x96xf32>
    %13 = vector.extract_strided_slice %12 {offsets = [0, 0], sizes = [8, 4], strides = [1, 1]} : vector<8x96xf32> to vector<8x4xf32>
    %14 = vector.shape_cast %13 : vector<8x4xf32> to vector<1x8x4xf32>
    %15 = vector.extract_strided_slice %12 {offsets = [0, 4], sizes = [8, 4], strides = [1, 1]} : vector<8x96xf32> to vector<8x4xf32>
    %16 = vector.shape_cast %15 : vector<8x4xf32> to vector<1x8x4xf32>
    %17 = vector.extract_strided_slice %12 {offsets = [0, 8], sizes = [8, 4], strides = [1, 1]} : vector<8x96xf32> to vector<8x4xf32>
    %18 = vector.shape_cast %17 : vector<8x4xf32> to vector<1x8x4xf32>
    %19 = vector.extract_strided_slice %12 {offsets = [0, 12], sizes = [8, 4], strides = [1, 1]} : vector<8x96xf32> to vector<8x4xf32>
    %20 = vector.shape_cast %19 : vector<8x4xf32> to vector<1x8x4xf32>
    %21 = vector.extract_strided_slice %12 {offsets = [0, 16], sizes = [8, 4], strides = [1, 1]} : vector<8x96xf32> to vector<8x4xf32>
    %22 = vector.shape_cast %21 : vector<8x4xf32> to vector<1x8x4xf32>
    %23 = vector.extract_strided_slice %12 {offsets = [0, 20], sizes = [8, 4], strides = [1, 1]} : vector<8x96xf32> to vector<8x4xf32>
    %24 = vector.shape_cast %23 : vector<8x4xf32> to vector<1x8x4xf32>
    %25 = vector.extract_strided_slice %12 {offsets = [0, 24], sizes = [8, 4], strides = [1, 1]} : vector<8x96xf32> to vector<8x4xf32>
    %26 = vector.shape_cast %25 : vector<8x4xf32> to vector<1x8x4xf32>
    %27 = vector.extract_strided_slice %12 {offsets = [0, 28], sizes = [8, 4], strides = [1, 1]} : vector<8x96xf32> to vector<8x4xf32>
    %28 = vector.shape_cast %27 : vector<8x4xf32> to vector<1x8x4xf32>
    %29 = vector.shape_cast %14 : vector<1x8x4xf32> to vector<1x1x8x4xf32>
    %30 = vector.shape_cast %16 : vector<1x8x4xf32> to vector<1x1x8x4xf32>
    %31 = vector.shape_cast %18 : vector<1x8x4xf32> to vector<1x1x8x4xf32>
    %32 = vector.shape_cast %20 : vector<1x8x4xf32> to vector<1x1x8x4xf32>
    %33 = vector.shape_cast %22 : vector<1x8x4xf32> to vector<1x1x8x4xf32>
    %34 = vector.shape_cast %24 : vector<1x8x4xf32> to vector<1x1x8x4xf32>
    %35 = vector.shape_cast %26 : vector<1x8x4xf32> to vector<1x1x8x4xf32>
    %36 = vector.shape_cast %28 : vector<1x8x4xf32> to vector<1x1x8x4xf32>
    %37 = tpu.concatenate %29, %30, %31, %32, %33, %34, %35, %36 in 1 : vector<1x1x8x4xf32>, vector<1x1x8x4xf32>, vector<1x1x8x4xf32>, vector<1x1x8x4xf32>, vector<1x1x8x4xf32>, vector<1x1x8x4xf32>, vector<1x1x8x4xf32>, vector<1x1x8x4xf32> -> vector<1x8x8x4xf32>
    %38 = vector.shape_cast %37 : vector<1x8x8x4xf32> to vector<8x8x4xf32>
    %39 = vector.extract_strided_slice %12 {offsets = [0, 32], sizes = [8, 4], strides = [1, 1]} : vector<8x96xf32> to vector<8x4xf32>
    %40 = vector.shape_cast %39 : vector<8x4xf32> to vector<1x8x4xf32>
    %41 = vector.extract_strided_slice %12 {offsets = [0, 36], sizes = [8, 4], strides = [1, 1]} : vector<8x96xf32> to vector<8x4xf32>
    %42 = vector.shape_cast %41 : vector<8x4xf32> to vector<1x8x4xf32>
    %43 = vector.extract_strided_slice %12 {offsets = [0, 40], sizes = [8, 4], strides = [1, 1]} : vector<8x96xf32> to vector<8x4xf32>
    %44 = vector.shape_cast %43 : vector<8x4xf32> to vector<1x8x4xf32>
    %45 = vector.extract_strided_slice %12 {offsets = [0, 44], sizes = [8, 4], strides = [1, 1]} : vector<8x96xf32> to vector<8x4xf32>
    %46 = vector.shape_cast %45 : vector<8x4xf32> to vector<1x8x4xf32>
    %47 = vector.extract_strided_slice %12 {offsets = [0, 48], sizes = [8, 4], strides = [1, 1]} : vector<8x96xf32> to vector<8x4xf32>
    %48 = vector.shape_cast %47 : vector<8x4xf32> to vector<1x8x4xf32>
    %49 = vector.extract_strided_slice %12 {offsets = [0, 52], sizes = [8, 4], strides = [1, 1]} : vector<8x96xf32> to vector<8x4xf32>
    %50 = vector.shape_cast %49 : vector<8x4xf32> to vector<1x8x4xf32>
    %51 = vector.extract_strided_slice %12 {offsets = [0, 56], sizes = [8, 4], strides = [1, 1]} : vector<8x96xf32> to vector<8x4xf32>
    %52 = vector.shape_cast %51 : vector<8x4xf32> to vector<1x8x4xf32>
    %53 = vector.extract_strided_slice %12 {offsets = [0, 60], sizes = [8, 4], strides = [1, 1]} : vector<8x96xf32> to vector<8x4xf32>
    %54 = vector.shape_cast %53 : vector<8x4xf32> to vector<1x8x4xf32>
    %55 = vector.shape_cast %40 : vector<1x8x4xf32> to vector<1x1x8x4xf32>
    %56 = vector.shape_cast %42 : vector<1x8x4xf32> to vector<1x1x8x4xf32>
    %57 = vector.shape_cast %44 : vector<1x8x4xf32> to vector<1x1x8x4xf32>
    %58 = vector.shape_cast %46 : vector<1x8x4xf32> to vector<1x1x8x4xf32>
    %59 = vector.shape_cast %48 : vector<1x8x4xf32> to vector<1x1x8x4xf32>
    %60 = vector.shape_cast %50 : vector<1x8x4xf32> to vector<1x1x8x4xf32>
    %61 = vector.shape_cast %52 : vector<1x8x4xf32> to vector<1x1x8x4xf32>
    %62 = vector.shape_cast %54 : vector<1x8x4xf32> to vector<1x1x8x4xf32>
    %63 = tpu.concatenate %55, %56, %57, %58, %59, %60, %61, %62 in 1 : vector<1x1x8x4xf32>, vector<1x1x8x4xf32>, vector<1x1x8x4xf32>, vector<1x1x8x4xf32>, vector<1x1x8x4xf32>, vector<1x1x8x4xf32>, vector<1x1x8x4xf32>, vector<1x1x8x4xf32> -> vector<1x8x8x4xf32>
    %64 = vector.shape_cast %63 : vector<1x8x8x4xf32> to vector<8x8x4xf32>
    %65 = vector.extract_strided_slice %12 {offsets = [0, 64], sizes = [8, 4], strides = [1, 1]} : vector<8x96xf32> to vector<8x4xf32>
    %66 = vector.shape_cast %65 : vector<8x4xf32> to vector<1x8x4xf32>
    %67 = vector.extract_strided_slice %12 {offsets = [0, 68], sizes = [8, 4], strides = [1, 1]} : vector<8x96xf32> to vector<8x4xf32>
    %68 = vector.shape_cast %67 : vector<8x4xf32> to vector<1x8x4xf32>
    %69 = vector.extract_strided_slice %12 {offsets = [0, 72], sizes = [8, 4], strides = [1, 1]} : vector<8x96xf32> to vector<8x4xf32>
    %70 = vector.shape_cast %69 : vector<8x4xf32> to vector<1x8x4xf32>
    %71 = vector.extract_strided_slice %12 {offsets = [0, 76], sizes = [8, 4], strides = [1, 1]} : vector<8x96xf32> to vector<8x4xf32>
    %72 = vector.shape_cast %71 : vector<8x4xf32> to vector<1x8x4xf32>
    %73 = vector.extract_strided_slice %12 {offsets = [0, 80], sizes = [8, 4], strides = [1, 1]} : vector<8x96xf32> to vector<8x4xf32>
    %74 = vector.shape_cast %73 : vector<8x4xf32> to vector<1x8x4xf32>
    %75 = vector.extract_strided_slice %12 {offsets = [0, 84], sizes = [8, 4], strides = [1, 1]} : vector<8x96xf32> to vector<8x4xf32>
    %76 = vector.shape_cast %75 : vector<8x4xf32> to vector<1x8x4xf32>
    %77 = vector.extract_strided_slice %12 {offsets = [0, 88], sizes = [8, 4], strides = [1, 1]} : vector<8x96xf32> to vector<8x4xf32>
    %78 = vector.shape_cast %77 : vector<8x4xf32> to vector<1x8x4xf32>
    %79 = vector.extract_strided_slice %12 {offsets = [0, 92], sizes = [8, 4], strides = [1, 1]} : vector<8x96xf32> to vector<8x4xf32>
    %80 = vector.shape_cast %79 : vector<8x4xf32> to vector<1x8x4xf32>
    %81 = vector.shape_cast %66 : vector<1x8x4xf32> to vector<1x1x8x4xf32>
    %82 = vector.shape_cast %68 : vector<1x8x4xf32> to vector<1x1x8x4xf32>
    %83 = vector.shape_cast %70 : vector<1x8x4xf32> to vector<1x1x8x4xf32>
    %84 = vector.shape_cast %72 : vector<1x8x4xf32> to vector<1x1x8x4xf32>
    %85 = vector.shape_cast %74 : vector<1x8x4xf32> to vector<1x1x8x4xf32>
    %86 = vector.shape_cast %76 : vector<1x8x4xf32> to vector<1x1x8x4xf32>
    %87 = vector.shape_cast %78 : vector<1x8x4xf32> to vector<1x1x8x4xf32>
    %88 = vector.shape_cast %80 : vector<1x8x4xf32> to vector<1x1x8x4xf32>
    %89 = tpu.concatenate %81, %82, %83, %84, %85, %86, %87, %88 in 1 : vector<1x1x8x4xf32>, vector<1x1x8x4xf32>, vector<1x1x8x4xf32>, vector<1x1x8x4xf32>, vector<1x1x8x4xf32>, vector<1x1x8x4xf32>, vector<1x1x8x4xf32>, vector<1x1x8x4xf32> -> vector<1x8x8x4xf32>
    %90 = vector.shape_cast %89 : vector<1x8x8x4xf32> to vector<8x8x4xf32>
    "tpu.trace_start"() <{level = 10 : i32, message = "gqe,gke->gqk"}> : () -> ()
    %cst_8 = arith.constant dense<0.000000e+00> : vector<8x8x8xf32>
    %91 = tpu.matmul %38, %64, %cst_8 {dimension_numbers = #tpu.dot_dimension_numbers<[2], [2], [1], [1], [0, 0, 0, 1, 1, 1], [0], [0]>} : vector<8x8x4xf32>, vector<8x8x4xf32>, vector<8x8x8xf32> -> vector<8x8x8xf32>
    "tpu.trace_stop"() : () -> ()
    %cst_9 = arith.constant dense<0xFF800000> : vector<8x8xf32>
    %92 = vector.multi_reduction <maximumf>, %91, %cst_9 [2] : vector<8x8x8xf32> to vector<8x8xf32>
    %93 = vector.shape_cast %92 : vector<8x8xf32> to vector<8x8x1xf32>
    %94 = vector.broadcast %93 : vector<8x8x1xf32> to vector<8x8x8xf32>
    %95 = arith.subf %91, %94 : vector<8x8x8xf32>
    %96 = math.exp %95 : vector<8x8x8xf32>
    %cst_10 = arith.constant dense<0.000000e+00> : vector<8x8xf32>
    %97 = vector.multi_reduction <add>, %96, %cst_10 [2] : vector<8x8x8xf32> to vector<8x8xf32>
    %98 = vector.shape_cast %97 : vector<8x8xf32> to vector<8x8x1xf32>
    %99 = tpu.reciprocal %98 {approx = true} : vector<8x8x1xf32> -> vector<8x8x1xf32>
    %100 = arith.mulf %98, %99 : vector<8x8x1xf32>
    %cst_11 = arith.constant 2.000000e+00 : f32
    %101 = vector.broadcast %cst_11 : f32 to vector<8x8x1xf32>
    %102 = arith.subf %101, %100 : vector<8x8x1xf32>
    %103 = arith.mulf %99, %102 : vector<8x8x1xf32>
    %104 = vector.broadcast %103 : vector<8x8x1xf32> to vector<8x8x8xf32>
    %105 = arith.mulf %96, %104 : vector<8x8x8xf32>
    "tpu.trace_start"() <{level = 10 : i32, message = "gqk,gke->gqe"}> : () -> ()
    %cst_12 = arith.constant dense<0.000000e+00> : vector<8x8x4xf32>
    %106 = tpu.matmul %105, %90, %cst_12 {dimension_numbers = #tpu.dot_dimension_numbers<[2], [1], [1], [2], [0, 0, 0, 1, 1, 2], [0], [0]>} : vector<8x8x8xf32>, vector<8x8x4xf32>, vector<8x8x4xf32> -> vector<8x8x4xf32>
    "tpu.trace_stop"() : () -> ()
    %107 = vector.shape_cast %106 : vector<8x8x4xf32> to vector<1x8x8x4xf32>
    %108 = vector.extract_strided_slice %107 {offsets = [0, 0, 0, 0], sizes = [1, 1, 8, 4], strides = [1, 1, 1, 1]} : vector<1x8x8x4xf32> to vector<1x1x8x4xf32>
    %109 = vector.shape_cast %108 : vector<1x1x8x4xf32> to vector<1x8x4xf32>
    %110 = vector.extract_strided_slice %107 {offsets = [0, 1, 0, 0], sizes = [1, 1, 8, 4], strides = [1, 1, 1, 1]} : vector<1x8x8x4xf32> to vector<1x1x8x4xf32>
    %111 = vector.shape_cast %110 : vector<1x1x8x4xf32> to vector<1x8x4xf32>
    %112 = vector.extract_strided_slice %107 {offsets = [0, 2, 0, 0], sizes = [1, 1, 8, 4], strides = [1, 1, 1, 1]} : vector<1x8x8x4xf32> to vector<1x1x8x4xf32>
    %113 = vector.shape_cast %112 : vector<1x1x8x4xf32> to vector<1x8x4xf32>
    %114 = vector.extract_strided_slice %107 {offsets = [0, 3, 0, 0], sizes = [1, 1, 8, 4], strides = [1, 1, 1, 1]} : vector<1x8x8x4xf32> to vector<1x1x8x4xf32>
    %115 = vector.shape_cast %114 : vector<1x1x8x4xf32> to vector<1x8x4xf32>
    %116 = vector.extract_strided_slice %107 {offsets = [0, 4, 0, 0], sizes = [1, 1, 8, 4], strides = [1, 1, 1, 1]} : vector<1x8x8x4xf32> to vector<1x1x8x4xf32>
    %117 = vector.shape_cast %116 : vector<1x1x8x4xf32> to vector<1x8x4xf32>
    %118 = vector.extract_strided_slice %107 {offsets = [0, 5, 0, 0], sizes = [1, 1, 8, 4], strides = [1, 1, 1, 1]} : vector<1x8x8x4xf32> to vector<1x1x8x4xf32>
    %119 = vector.shape_cast %118 : vector<1x1x8x4xf32> to vector<1x8x4xf32>
    %120 = vector.extract_strided_slice %107 {offsets = [0, 6, 0, 0], sizes = [1, 1, 8, 4], strides = [1, 1, 1, 1]} : vector<1x8x8x4xf32> to vector<1x1x8x4xf32>
    %121 = vector.shape_cast %120 : vector<1x1x8x4xf32> to vector<1x8x4xf32>
    %122 = vector.extract_strided_slice %107 {offsets = [0, 7, 0, 0], sizes = [1, 1, 8, 4], strides = [1, 1, 1, 1]} : vector<1x8x8x4xf32> to vector<1x1x8x4xf32>
    %123 = vector.shape_cast %122 : vector<1x1x8x4xf32> to vector<1x8x4xf32>
    %124 = tpu.concatenate %109, %111, %113, %115, %117, %119, %121, %123 in 2 : vector<1x8x4xf32>, vector<1x8x4xf32>, vector<1x8x4xf32>, vector<1x8x4xf32>, vector<1x8x4xf32>, vector<1x8x4xf32>, vector<1x8x4xf32>, vector<1x8x4xf32> -> vector<1x8x32xf32>
    %125 = vector.shape_cast %124 : vector<1x8x32xf32> to vector<8x32xf32>
    %c0_13 = arith.constant 0 : index
    %c0_14 = arith.constant 0 : index
    %c0_15 = arith.constant 0 : index
    %126 = vector.load %arg6[%c0_13, %c0_14, %c0_15] : memref<1x32x32xf32, #tpu.memory_space<vmem>>, vector<1x32x32xf32>
    %127 = vector.shape_cast %126 : vector<1x32x32xf32> to vector<32x32xf32>
    %cst_16 = arith.constant dense<0.000000e+00> : vector<8x32xf32>
    %128 = tpu.matmul %125, %127, %cst_16 {dimension_numbers = #tpu.dot_dimension_numbers<[1], [0], [0], [1], [0, 0, 1, 1], [], []>} : vector<8x32xf32>, vector<32x32xf32>, vector<8x32xf32> -> vector<8x32xf32>
    %c0_17 = arith.constant 0 : index
    %c0_18 = arith.constant 0 : index
    %c0_19 = arith.constant 0 : index
    %129 = vector.load %arg10[%c0_17, %c0_18, %c0_19] : memref<1x2x32xf32, #tpu.memory_space<vmem>>, vector<1x1x32xf32>
    %130 = vector.shape_cast %129 : vector<1x1x32xf32> to vector<1x32xf32>
    %131 = vector.broadcast %130 : vector<1x32xf32> to vector<8x32xf32>
    %132 = arith.addf %128, %131 : vector<8x32xf32>
    %133 = vector.broadcast %5 : f32 to vector<8x32xf32>
    %134 = arith.mulf %133, %132 : vector<8x32xf32>
    %135 = arith.addf %3, %134 : vector<8x32xf32>
    %c0_20 = arith.constant 0 : index
    %c0_21 = arith.constant 0 : index
    %c0_22 = arith.constant 0 : index
    %136 = vector.load %arg7[%c0_20, %c0_21, %c0_22] : memref<1x32x64xf32, #tpu.memory_space<vmem>>, vector<1x32x64xf32>
    %137 = vector.shape_cast %136 : vector<1x32x64xf32> to vector<32x64xf32>
    %cst_23 = arith.constant dense<0.000000e+00> : vector<8x64xf32>
    %138 = tpu.matmul %135, %137, %cst_23 {dimension_numbers = #tpu.dot_dimension_numbers<[1], [0], [0], [1], [0, 0, 1, 1], [], []>} : vector<8x32xf32>, vector<32x64xf32>, vector<8x64xf32> -> vector<8x64xf32>
    %c0_24 = arith.constant 0 : index
    %c0_25 = arith.constant 0 : index
    %c0_26 = arith.constant 0 : index
    %139 = vector.load %arg11[%c0_24, %c0_25, %c0_26] : memref<1x1x64xf32, #tpu.memory_space<vmem>>, vector<1x1x64xf32>
    %140 = vector.shape_cast %139 : vector<1x1x64xf32> to vector<1x64xf32>
    %141 = vector.broadcast %140 : vector<1x64xf32> to vector<8x64xf32>
    %142 = arith.addf %138, %141 : vector<8x64xf32>
    %cst_27 = arith.constant 5.000000e-01 : f32
    %143 = vector.broadcast %cst_27 : f32 to vector<8x64xf32>
    %144 = arith.mulf %143, %142 : vector<8x64xf32>
    %cst_28 = arith.constant 0.707106769 : f32
    %145 = vector.broadcast %cst_28 : f32 to vector<8x64xf32>
    %146 = arith.mulf %142, %145 : vector<8x64xf32>
    %147 = math.absf %146 : vector<8x64xf32>
    %cst_29 = arith.constant 0.327591091 : f32
    %148 = vector.broadcast %cst_29 : f32 to vector<8x64xf32>
    %149 = arith.mulf %148, %147 : vector<8x64xf32>
    %cst_30 = arith.constant 1.000000e+00 : f32
    %150 = vector.broadcast %cst_30 : f32 to vector<8x64xf32>
    %151 = arith.addf %150, %149 : vector<8x64xf32>
    %cst_31 = arith.constant 1.000000e+00 : f32
    %152 = vector.broadcast %cst_31 : f32 to vector<8x64xf32>
    %153 = arith.divf %152, %151 : vector<8x64xf32>
    %cst_32 = arith.constant 1.06140542 : f32
    %154 = vector.broadcast %cst_32 : f32 to vector<8x64xf32>
    %155 = arith.mulf %153, %154 : vector<8x64xf32>
    %cst_33 = arith.constant -1.45315206 : f32
    %156 = vector.broadcast %cst_33 : f32 to vector<8x64xf32>
    %157 = arith.addf %156, %155 : vector<8x64xf32>
    %158 = arith.mulf %153, %157 : vector<8x64xf32>
    %cst_34 = arith.constant 1.42141378 : f32
    %159 = vector.broadcast %cst_34 : f32 to vector<8x64xf32>
    %160 = arith.addf %159, %158 : vector<8x64xf32>
    %161 = arith.mulf %153, %160 : vector<8x64xf32>
    %cst_35 = arith.constant -0.284496725 : f32
    %162 = vector.broadcast %cst_35 : f32 to vector<8x64xf32>
    %163 = arith.addf %162, %161 : vector<8x64xf32>
    %164 = arith.mulf %153, %163 : vector<8x64xf32>
    %cst_36 = arith.constant 0.254829586 : f32
    %165 = vector.broadcast %cst_36 : f32 to vector<8x64xf32>
    %166 = arith.addf %165, %164 : vector<8x64xf32>
    %167 = arith.mulf %153, %166 : vector<8x64xf32>
    %cst_37 = arith.constant 0.000000e+00 : f32
    %168 = vector.broadcast %cst_37 : f32 to vector<8x64xf32>
    %169 = arith.subf %168, %147 : vector<8x64xf32>
    %170 = arith.mulf %169, %147 : vector<8x64xf32>
    %171 = math.exp %170 : vector<8x64xf32>
    %172 = arith.mulf %167, %171 : vector<8x64xf32>
    %cst_38 = arith.constant 1.000000e+00 : f32
    %173 = vector.broadcast %cst_38 : f32 to vector<8x64xf32>
    %174 = arith.subf %173, %172 : vector<8x64xf32>
    %cst_39 = arith.constant 0.000000e+00 : f32
    %175 = vector.broadcast %cst_39 : f32 to vector<8x64xf32>
    %176 = arith.cmpf oge, %146, %175 : vector<8x64xf32>
    %cst_40 = arith.constant 0.000000e+00 : f32
    %177 = vector.broadcast %cst_40 : f32 to vector<8x64xf32>
    %178 = arith.subf %177, %174 : vector<8x64xf32>
    %179 = arith.select %176, %174, %178 : vector<8x64xi1>, vector<8x64xf32>
    %cst_41 = arith.constant 1.000000e+00 : f32
    %180 = vector.broadcast %cst_41 : f32 to vector<8x64xf32>
    %181 = arith.addf %180, %179 : vector<8x64xf32>
    %182 = arith.mulf %144, %181 : vector<8x64xf32>
    %c0_42 = arith.constant 0 : index
    %c0_43 = arith.constant 0 : index
    %c0_44 = arith.constant 0 : index
    %183 = vector.load %arg8[%c0_42, %c0_43, %c0_44] : memref<1x64x32xf32, #tpu.memory_space<vmem>>, vector<1x64x32xf32>
    %184 = vector.shape_cast %183 : vector<1x64x32xf32> to vector<64x32xf32>
    %cst_45 = arith.constant dense<0.000000e+00> : vector<8x32xf32>
    %185 = tpu.matmul %182, %184, %cst_45 {dimension_numbers = #tpu.dot_dimension_numbers<[1], [0], [0], [1], [0, 0, 1, 1], [], []>} : vector<8x64xf32>, vector<64x32xf32>, vector<8x32xf32> -> vector<8x32xf32>
    %c0_46 = arith.constant 0 : index
    %c1 = arith.constant 1 : index
    %c0_47 = arith.constant 0 : index
    %186 = vector.load %arg10[%c0_46, %c1, %c0_47] : memref<1x2x32xf32, #tpu.memory_space<vmem>>, vector<1x1x32xf32>
    %187 = vector.shape_cast %186 : vector<1x1x32xf32> to vector<1x32xf32>
    %188 = vector.broadcast %187 : vector<1x32xf32> to vector<8x32xf32>
    %189 = arith.addf %185, %188 : vector<8x32xf32>
    %190 = vector.broadcast %5 : f32 to vector<8x32xf32>
    %191 = arith.mulf %190, %189 : vector<8x32xf32>
    %192 = arith.addf %135, %191 : vector<8x32xf32>
    %c0_48 = arith.constant 0 : index
    %c0_49 = arith.constant 0 : index
    %193 = vector.load %arg15[%c0_48, %c0_49] : memref<8x32xf32, #tpu.memory_space<vmem>>, vector<8x32xf32>
    tpu.vector_store %arg15[%c0_48, %c0_49], %192 {strides = array<i32>} : memref<8x32xf32, #tpu.memory_space<vmem>>, vector<8x32xf32>,
    %c1_i32 = arith.constant 1 : i32
    %194 = arith.cmpi eq, %arg1, %c1_i32 : i32
    %195 = arith.extui %194 : i1 to i32
    %c0_i32_50 = arith.constant 0 : i32
    %196 = arith.cmpi ne, %195, %c0_i32_50 : i32
    scf.if %196 {
      %cst_51 = arith.constant dense<0.000000e+00> : vector<8xf32>
      %197 = vector.multi_reduction <add>, %192, %cst_51 [1] : vector<8x32xf32> to vector<8xf32>
      %198 = vector.shape_cast %197 : vector<8xf32> to vector<8x1xf32>
      %cst_52 = arith.constant 3.200000e+01 : f32
      %199 = vector.broadcast %cst_52 : f32 to vector<8x1xf32>
      %200 = arith.divf %198, %199 : vector<8x1xf32>
      %201 = vector.broadcast %200 : vector<8x1xf32> to vector<8x32xf32>
      %202 = arith.subf %192, %201 : vector<8x32xf32>
      %203 = arith.mulf %202, %202 : vector<8x32xf32>
      %cst_53 = arith.constant dense<0.000000e+00> : vector<8xf32>
      %204 = vector.multi_reduction <add>, %203, %cst_53 [1] : vector<8x32xf32> to vector<8xf32>
      %205 = vector.shape_cast %204 : vector<8xf32> to vector<8x1xf32>
      %cst_54 = arith.constant 3.200000e+01 : f32
      %206 = vector.broadcast %cst_54 : f32 to vector<8x1xf32>
      %207 = arith.divf %205, %206 : vector<8x1xf32>
      %cst_55 = arith.constant 9.99999974E-6 : f32
      %208 = vector.broadcast %cst_55 : f32 to vector<8x1xf32>
      %209 = arith.addf %207, %208 : vector<8x1xf32>
      %210 = math.rsqrt %209 : vector<8x1xf32>
      %211 = vector.broadcast %210 : vector<8x1xf32> to vector<8x32xf32>
      %212 = arith.mulf %202, %211 : vector<8x32xf32>
      %c0_56 = arith.constant 0 : index
      %c0_57 = arith.constant 0 : index
      %213 = vector.load %arg13[%c0_56, %c0_57] : memref<2x32xf32, #tpu.memory_space<vmem>>, vector<1x32xf32>
      %214 = vector.broadcast %213 : vector<1x32xf32> to vector<8x32xf32>
      %215 = arith.mulf %212, %214 : vector<8x32xf32>
      %c1_58 = arith.constant 1 : index
      %c0_59 = arith.constant 0 : index
      %216 = vector.load %arg13[%c1_58, %c0_59] : memref<2x32xf32, #tpu.memory_space<vmem>>, vector<1x32xf32>
      %217 = vector.broadcast %216 : vector<1x32xf32> to vector<8x32xf32>
      %218 = arith.addf %215, %217 : vector<8x32xf32>
      %219 = vector.shape_cast %218 : vector<8x32xf32> to vector<1x8x32xf32>
      %c0_60 = arith.constant 0 : index
      %c0_61 = arith.constant 0 : index
      %c0_62 = arith.constant 0 : index
      %220 = vector.load %arg14[%c0_60, %c0_61, %c0_62] : memref<1x8x32xf32, #tpu.memory_space<vmem>>, vector<1x8x32xf32>
      tpu.vector_store %arg14[%c0_60, %c0_61, %c0_62], %219 {strides = array<i32>} : memref<1x8x32xf32, #tpu.memory_space<vmem>>, vector<1x8x32xf32>,
    } else {
    }
    return
  }
  func.func @transform_0(%arg0: i32, %arg1: i32) -> (i32, i32, i32) {
    %c0_i32 = arith.constant 0 : i32
    %c0_i32_0 = arith.constant 0 : i32
    %c0_i32_1 = arith.constant 0 : i32
    return %arg0, %c0_i32, %c0_i32_0 : i32, i32, i32
  }
  func.func @transform_1(%arg0: i32, %arg1: i32) -> (i32, i32) {
    %c0_i32 = arith.constant 0 : i32
    %c0_i32_0 = arith.constant 0 : i32
    %c0_i32_1 = arith.constant 0 : i32
    return %c0_i32, %c0_i32_0 : i32, i32
  }
  func.func @transform_2(%arg0: i32, %arg1: i32) -> (i32, i32) {
    %c0_i32 = arith.constant 0 : i32
    %c0_i32_0 = arith.constant 0 : i32
    %c0_i32_1 = arith.constant 0 : i32
    return %c0_i32, %c0_i32_0 : i32, i32
  }
  func.func @transform_3(%arg0: i32, %arg1: i32) -> (i32, i32, i32) {
    %c0_i32 = arith.constant 0 : i32
    %c0_i32_0 = arith.constant 0 : i32
    %c0_i32_1 = arith.constant 0 : i32
    return %arg1, %c0_i32, %c0_i32_0 : i32, i32, i32
  }
  func.func @transform_4(%arg0: i32, %arg1: i32) -> (i32, i32, i32) {
    %c0_i32 = arith.constant 0 : i32
    %c0_i32_0 = arith.constant 0 : i32
    %c0_i32_1 = arith.constant 0 : i32
    return %arg1, %c0_i32, %c0_i32_0 : i32, i32, i32
  }
  func.func @transform_5(%arg0: i32, %arg1: i32) -> (i32, i32, i32) {
    %c0_i32 = arith.constant 0 : i32
    %c0_i32_0 = arith.constant 0 : i32
    %c0_i32_1 = arith.constant 0 : i32
    return %arg1, %c0_i32, %c0_i32_0 : i32, i32, i32
  }
  func.func @transform_6(%arg0: i32, %arg1: i32) -> (i32, i32, i32) {
    %c0_i32 = arith.constant 0 : i32
    %c0_i32_0 = arith.constant 0 : i32
    %c0_i32_1 = arith.constant 0 : i32
    return %arg1, %c0_i32, %c0_i32_0 : i32, i32, i32
  }
  func.func @transform_7(%arg0: i32, %arg1: i32) -> (i32, i32, i32) {
    %c0_i32 = arith.constant 0 : i32
    %c0_i32_0 = arith.constant 0 : i32
    %c0_i32_1 = arith.constant 0 : i32
    return %arg1, %c0_i32, %c0_i32_0 : i32, i32, i32
  }
  func.func @transform_8(%arg0: i32, %arg1: i32) -> (i32, i32, i32) {
    %c0_i32 = arith.constant 0 : i32
    %c0_i32_0 = arith.constant 0 : i32
    %c0_i32_1 = arith.constant 0 : i32
    return %arg1, %c0_i32, %c0_i32_0 : i32, i32, i32
  }
  func.func @transform_9(%arg0: i32, %arg1: i32) -> (i32, i32, i32) {
    %c0_i32 = arith.constant 0 : i32
    %c0_i32_0 = arith.constant 0 : i32
    %c0_i32_1 = arith.constant 0 : i32
    return %arg1, %c0_i32, %c0_i32_0 : i32, i32, i32
  }
  func.func @transform_10(%arg0: i32, %arg1: i32) -> i32 {
    %c0_i32 = arith.constant 0 : i32
    %c0_i32_0 = arith.constant 0 : i32
    return %c0_i32 : i32
  }
  func.func @transform_11(%arg0: i32, %arg1: i32) -> (i32, i32) {
    %c0_i32 = arith.constant 0 : i32
    %c0_i32_0 = arith.constant 0 : i32
    %c0_i32_1 = arith.constant 0 : i32
    return %c0_i32, %c0_i32_0 : i32, i32
  }
  func.func @transform_12(%arg0: i32, %arg1: i32) -> (i32, i32, i32) {
    %c0_i32 = arith.constant 0 : i32
    %c0_i32_0 = arith.constant 0 : i32
    %c0_i32_1 = arith.constant 0 : i32
    return %arg0, %c0_i32, %c0_i32_0 : i32, i32, i32
  }
}

</mosaic_0001>

<bundles_post_ra>
// kernel: tpu_custom_call.1
= control target key start
LH: loop header
LB: loop body
LE: loop exit
PB: predicated region body
PF: predicated region fallthrough
CT: control target
= control target key end

     0   :  { %s3937_s0 = inlined_call_operand.hbm [shape: f32[2,8,16], index: 0, kind: input, shape index: {}]   ;;  %s3938_s1 = inlined_call_operand.hbm [shape: f32[16,32], index: 1, kind: input, shape index: {}]   ;;  %s3939_s2 = inlined_call_operand.hbm [shape: f32[8,32], index: 2, kind: input, shape index: {}]   ;;  %s3940_s3 = inlined_call_operand.vmem [shape: f32[2,32,96], index: 3, kind: input, shape index: {}]   ;;  %s3941_s4 = inlined_call_operand.vmem [shape: f32[2,32,32], index: 4, kind: input, shape index: {}]   ;;  %s3942_s5 = inlined_call_operand.vmem [shape: f32[2,32,64], index: 5, kind: input, shape index: {}]   ;;  %s3943_s6 = inlined_call_operand.vmem [shape: f32[2,64,32], index: 6, kind: input, shape index: {}]   ;;  %s3944_s7 = inlined_call_operand.vmem [shape: f32[2,1,96], index: 7, kind: input, shape index: {}]   ;;  %s3945_s8 = inlined_call_operand.vmem [shape: f32[2,2,32], index: 8, kind: input, shape index: {}]   ;;  %s3946_s9 = inlined_call_operand.vmem [shape: f32[2,1,64], index: 9, kind: input, shape index: {}]   ;;  %s3947_s10 = inlined_call_operand.vmem [shape: f32[2], index: 10, kind: input, shape index: {}]   ;;  %s3948_s11 = inlined_call_operand.vmem [shape: f32[2,32], index: 11, kind: input, shape index: {}]   ;;  %s3949_s12 = inlined_call_operand.hbm [shape: f32[2,8,32], index: 12, kind: output, shape index: {}]  }
   0x1   :  { %3962 = sst [smem:[#allocation26_spill]] %s3937_s0 }
   0x2   :  { %3963 = sst [smem:[#allocation27_spill]] %s3938_s1 }
   0x3   :  { %3964 = sst [smem:[#allocation28_spill]] %s3939_s2 }
   0x4   :  { %3965 = sst [smem:[#allocation29_spill]] %s3940_s3 }
   0x5   :  { %3966 = sst [smem:[#allocation30_spill]] %s3941_s4 }
   0x6   :  { %3967 = sst [smem:[#allocation31_spill]] %s3947_s10 }
   0x7   :  { %3968 = sst [smem:[#allocation32_spill]] %s3948_s11 }
   0x8   :  { %3969 = sst [smem:[#allocation33_spill]] %s3949_s12 }
   0x9   :  { %17 = vsyncpa [#allocation4], 0 }
   0xa   :  { %19 = vsyncpa [#allocation4 + $0x1], 0 }
   0xb   :  { %20 = vsyncpa [#allocation8], 0 }
   0xc   :  { %21 = vsyncpa [#allocation6], 0 }
   0xd   :  { %22 = vsyncpa [#allocation5], 0 }
   0xe   :  { %24 = vsyncpa [#allocation5 + $0x1], 0  ;;  %s3414_s21 = smov 0   ;;  %s3416_s22 = smov 0  }
   0xf   :  { %s3418_s23 = smov 0   ;;  %s3420_s24 = smov 0  }
  0x10   :  { %s3422_s25 = smov 0   ;;  %s3424_s26 = smov 0  }
  0x11   :  { %s3426_s27 = smov 0   ;;  %s3428_s28 = smov 0  }
  0x12 LB: > { %3970 = sst [smem:[#allocation16_spill]] %s3292_s21  ;;  %s2685_s29 = sadd.s32 4294967295, %s3320_s28   ;;  %s3320_s28 = sphi %s3428_s28, %s30_s28   ;;  %s3316_s27 = sphi %s3426_s27, %s4009_s27   ;;  %s3312_s26 = sphi %s3424_s26, %s4008_s26   ;;  %s3308_s25 = sphi %s3422_s25, %s4007_s25   ;;  %s3304_s24 = sphi %s3420_s24, %s4006_s24   ;;  %s3300_s23 = sphi %s3418_s23, %s4005_s23   ;;  %s3296_s22 = sphi %s3416_s22, %s4004_s22   ;;  %s3292_s21 = sphi %s3414_s21, %s4003_s21  }
  0x13   : > { %3971 = sst [smem:[#allocation17_spill]] %s3296_s22  ;;  %s2686_s30 = sadd.s32 4294967294, %s3320_s28  }
  0x14   : > { %3972 = sst [smem:[#allocation18_spill]] %s3300_s23  ;;  %p62_p0 = scmp.ne.s32.totalorder %s3296_s22, %s3292_s21 }
  0x15   : > { %3973 = sst [smem:[#allocation19_spill]] %s3308_s25  ;;  %p3458_p1 = scmp.eq.s32.totalorder %s2685_s29, 0 }
  0x16   : > { %3974 = sst [smem:[#allocation20_spill]] %s3312_s26  ;;  %p3462_p2 = scmp.eq.s32.totalorder %s2685_s29, 3 }
  0x17   : > { %3975 = sst [smem:[#allocation21_spill]] %s3316_s27  ;;  %p358_p3 = scmp.eq.s32.totalorder %s2686_s30, 3 }
  0x18   : > { %s3976_s13 = scalar_select %p3458_p1, 1, 0 }
  0x19   : > { %p3468_p4 = por %p3458_p1, %p62_p0  ;;  %p2687_p5 = scmp.ge.s32.totalorder %s3320_s28, 1 }
  0x1a   : > { %p3473_p6 = por %p358_p3, %p62_p0  ;;  %p365_p7 = scmp.lt.s32.totalorder %s3320_s28, 5 }
  0x1b   : > { %s3978_s15 = scalar_select %p3468_p4, 1, 0 }
  0x1c   : > { %s3979_s16 = scalar_select %p3473_p6, 1, 0 }
  0x1d   : > { %p3478_p8 = pnand %p2687_p5, %p365_p7  ;;  %s3322_s18 = smov [#allocation7]  }
  0x1e   : > { %3980 = sst [smem:[#allocation22_spill]] %s3979_s16  ;;  %s377_s19 = sshll.u32 %s3322_s18, 4  ;;  %s378_s19 = int_to_ptr.vmem [resolvable:$true] %s377_s19 }
  0x1f   : > { %p2968_p9 = pneg %p3478_p8  ;;  %s3323_s29 = smov [#allocation9]  }
  0x20   : > { %s391_s30 = sshll.u32 %s3323_s29, 4  ;;  %s3983_s10 = sld [smem:[#allocation31_spill]]  ;;  %s392_s30 = int_to_ptr.vmem [resolvable:$true] %s391_s30 }
  0x21   : > { %p3486_p10 = pnand %p2968_p9, %p3458_p1  ;;  %s3132_s18 = scalar_lea.vmem %s378_s19, 256 }
  0x22   : > { %p3133_p12 = scmp.ne.s32.totalorder %s378_s19, %s3132_s18  ;;  %p3140_p3 = scmp.lt.s32.totalorder %s378_s19, %s378_s19 }
  0x23   : > { %p3123_p11 = pneg %p3486_p10  ;;  %p3141_p5 = scmp.lt.s32.totalorder %s3132_s18, %s3132_s18 }
  0x25   : > { %p3135_p13 = pnand %p3133_p12, %p3123_p11  ;;  %p3142_p7 = por %p3141_p5, %p3140_p3 }
  0x26   : > { %s402_s12 = sshll.u32 %s3983_s10, 4  ;;  %s3493_s12 = int_to_ptr.vmem [resolvable:$true] %s402_s12 }
  0x27   : > { %p3136_p0 = pneg %p3135_p13 }
  0x29   : > { %p3143_p9 = pnand %p3142_p7, %p3136_p0 }
  0x2b   : > { %3146 = shalt.err (!%p3143_p9)
}
  0x2c   : > { %s3324_s29 = smov 128   ;;  %s3325_s21 = smov 8  }
  0x2d   : > { %s3984_s1 = sld [smem:[#allocation27_spill]]  ;;  %s3158_s25 = scalar_lea.vmem %s392_s30, 128 }
  0x2e   : > { %p3159_p6 = scmp.ne.s32.totalorder %s392_s30, %s3158_s25  ;;  %p3166_p1 = scmp.lt.s32.totalorder %s392_s30, %s392_s30 }
  0x2f   : > { %p3167_p4 = scmp.lt.s32.totalorder %s3158_s25, %s3158_s25 }
  0x30   : > { %p3161_p12 = pnand %p3159_p6, %p3123_p11 }
  0x31   : > { %p3168_p3 = por %p3167_p4, %p3166_p1 }
  0x32   : > { %p3162_p13 = pneg %p3161_p12 }
  0x33   : > { %2971 = dma.hbm_to_vmem [thread:$0]  (!%p3486_p10), %s3984_s1, 256, %s378_s19, [#allocation8], %s3324_s29, %s3324_s29, %s3325_s21  }
  0x34   : > { %p3169_p0 = pnand %p3168_p3, %p3162_p13 }
  0x36   : > { %3172 = shalt.err (!%p3169_p0)
}
  0x37   : > { %s3985_s2 = sld [smem:[#allocation28_spill]]  ;;  %s3173_s10 = scalar_lea.vmem %s3493_s12, 16 }
  0x38   : > { %p3174_p5 = scmp.ne.s32.totalorder %s3493_s12, %s3173_s10  ;;  %p3181_p1 = scmp.lt.s32.totalorder %s3493_s12, %s3493_s12 }
  0x39   : > { %p3182_p4 = scmp.lt.s32.totalorder %s3173_s10, %s3173_s10 }
  0x3a   : > { %p3176_p6 = pnand %p3174_p5, %p3123_p11 }
  0x3b   : > { %p3183_p9 = por %p3182_p4, %p3181_p1 }
  0x3c   : > { %p3177_p7 = pneg %p3176_p6 }
  0x3d   : > { %2974 = dma.hbm_to_vmem [thread:$0]  (!%p3486_p10), %s3985_s2, 128, %s392_s30, [#allocation8]  }
  0x3e   : > { %p3184_p12 = pnand %p3183_p9, %p3177_p7 }
  0x40   : > { %3187 = shalt.err (!%p3184_p12)
}
  0x41   : > { %s3326_s25 = smov [#allocation10]   ;;  %s39_s11 = sadd.s32 1, %s3312_s26 }
  0x42   : > { %2977 = dma.vmem_to_smem (!%p3486_p10), %s3493_s12, 16, %s3326_s25, [#allocation6]  }
  0x43   : > { %p40_p11 = scmp.ge.s32.totalorder %s39_s11, 2  ;;  %s42_s19 = sadd.s32 1, %s3316_s27 }
  0x44   : > { %s49_s30 = sadd.s32 1, %s3300_s23  ;;  %p56_p13 = scmp.ne.s32.totalorder %s3300_s23, %s3296_s22 }
  0x45   : > { %s4011_s11 = smov (%p40_p11, %s39_s11), 0  ;;  %s4013_s19 = smov (!%p40_p11, %s42_s19), %s3316_s27 }
  0x46   : > { %3986 = sst [smem:[#allocation23_spill]] %s4011_s11  ;;  %p57_p3 = scmp.eq.s32.totalorder %s3320_s28, 0 }
  0x47   : > { %p3534_p0 = por %p3462_p2, %p56_p13  ;;  %p44_p5 = scmp.ge.s32.totalorder %s4013_s19, 2 }
  0x48   : > { %p2989_p10 = scmp.lt.s32.totalorder %s3320_s28, 4  ;;  %p58_p6 = por %p57_p3, %p56_p13 }
  0x49   : > { %s416_s12 = sand.u32 1, %s3300_s23   ;;  %s4015_s19 = smov (%p44_p5, %s4013_s19), 0 }
  0x4a   : > { %3988 = sst [smem:[#allocation24_spill]] %s4015_s19  ;;  %s2692_s29 = sshll.u32 %s416_s12, 3 }
  0x4b   : > { %s46_s21 = ssub.s32 %s3316_s27, %s4015_s19  ;;  %s2693_s16 = sshll.u32 %s3316_s27, 7 }
  0x4c   : > { %p47_p7 = scmp.eq.s32.totalorder %s46_s21, 0  ;;  %s3989_s0 = sld [smem:[#allocation26_spill]] }
  0x4d   : > { %s420_s25 = scalar_lea.vmem [#allocation3], %s2692_s29  ;;  %p3553_p2 = pnand %p2989_p10, %p58_p6 }
  0x4e   : > { %s427_s1 = sshll.u32 %s420_s25, 4  ;;  %s417_s26 = scalar_lea.sflag [#allocation4], %s416_s12  ;;  %s428_s1 = int_to_ptr.vmem [resolvable:$true] %s427_s1 }
  0x4f   : > { %s3549_s2 = scalar_select %p47_p7, %s3300_s23, %s49_s30  }
  0x50   : > { %p3190_p1 = pneg %p3553_p2  ;;  %s3201_s21 = scalar_lea.vmem %s428_s1, 128 }
  0x51   : > { %3990 = sst [smem:[#allocation25_spill]] %s3549_s2  ;;  %p3202_p4 = scmp.ne.s32.totalorder %s428_s1, %s3201_s21 }
  0x52   : > { %s425_s14 = scalar_lea.hbm %s3989_s0, %s2693_s16  ;;  %s3327_s18 = smov [#allocation3]  }
  0x53   : > { %p3204_p9 = pnand %p3202_p4, %p3190_p1  ;;  %s3206_s16 = sshll.u32 %s3327_s18, 4  ;;  %s3207_s16 = int_to_ptr.vmem [resolvable:$false] %s3206_s16 }
  0x54   : > { %s3208_s29 = scalar_lea.vmem %s3207_s16, 256  ;;  %p3209_p11 = scmp.lt.s32.totalorder %s428_s1, %s3207_s16 }
  0x55   : > { %p3205_p12 = pneg %p3204_p9  ;;  %p3210_p13 = scmp.lt.s32.totalorder %s3208_s29, %s3201_s21 }
  0x57   : > { %p3211_p3 = por %p3210_p13, %p3209_p11 }
  0x59   : > { %p3212_p5 = pnand %p3211_p3, %p3205_p12 }
  0x5b   : > { %3215 = shalt.err (!%p3212_p5)
}
  0x5c   : > { %2981 = dma.hbm_to_vmem [thread:$0]  (!%p3553_p2), %s425_s14, 128, %s428_s1, %s417_s26  }
  0x5d   : > { %487 = sbr.rel (%p3478_p8) target bundleno = 2569 (0xa09), region = 68  ;;  %s3564_s30 = sand.u32 (!%p3478_p8), 1, %s3296_s22  }
  0x5e   : > { %s2695_s12 = sshll.u32 (!%p3478_p8), %s3564_s30, 3  ;;  %s490_s10 = scalar_lea.sflag (!%p3478_p8), [#allocation4], %s3564_s30 }
  0x5f   : > { %s493_s25 = scalar_lea.vmem (!%p3478_p8), [#allocation3], %s2695_s12  ;;  %p3992_p10 = scmp.ne.s32.totalorder (!%p3478_p8), %s3978_s15, 0 }
  0x62   : > { %3275 = dma.done.wait (%p3992_p10), %s490_s10, 128  }
  0x63   : > { %3277 = vsyncadd (%p3992_p10), %s490_s10, 4294967168  ;;  %p3993_p6 = scmp.ne.s32.totalorder %s3976_s13, 0 }
  0x65   : > { %3279 = dma.done.wait (%p3993_p6), [#allocation8], 384  }
  0x66   : > { %3281 = vsyncadd (%p3993_p6), [#allocation8], 4294966912 }
  0x67   : > { %3283 = dma.done.wait (%p3993_p6), [#allocation6], 16  }
  0x68   : > { %3285 = vsyncadd (%p3993_p6), [#allocation6], 4294967280 }
  0x69   : > { %510 = sfence }
  0x6a   : > { %p577_p8 = scmp.lt.s32.totalorder %s3304_s24, 1  ;;  %s3994_s3 = sld [smem:[#allocation29_spill]] }
  0x6b   : > { %s3995_s4 = sld [smem:[#allocation30_spill]]  ;;  %s3620_s16 = scalar_lea.vmem [#allocation11], %s2695_s12 }
  0x6c   : > { %s3582_s1 = scalar_select %p577_p8, %s3304_s24, 1 }
  0x6d   : > { %p2709_p7 = scmp.ne.s32.totalorder %s3304_s24, 0 }
  0x6e   : > { %s2750_s26 = sshll.u32 %s3582_s1, 5  ;;  %s2753_s15 = sshll.u32 %s3582_s1, 6 }
  0x6f   : > { %s3599_s10 = scalar_lea.vmem %s3942_s5, %s2750_s26  ;;  %s3604_s27 = scalar_lea.vmem %s3943_s6, %s2753_s15 }
  0x70   : > { %s3589_s14 = scalar_lea.vmem %s3994_s3, %s2750_s26  ;;  %s599_s17 = scalar_lea.vmem %s3944_s7, %s3582_s1 }
  0x71   : > { %s3594_s18 = scalar_lea.vmem %s3995_s4, %s2750_s26  ;;  %s2708_s11 = sshll.u32 %s3582_s1, 1 }
  0x72   : > { %s3614_s13 = scalar_lea.vmem %s3945_s8, %s2708_s11  ;;  %s606_s26 = scalar_lea.vmem %s3946_s9, %s3582_s1 }
  0x73   : > { %610 = sbr.rel (%p2709_p7) target bundleno = 321 (0x141), region = 88 }
  0x78   : > { %v613_v0 = vld [vmem:[#allocation7 + $0x8] sm:$0xff]  ;;  %v3328_v1 = vmov 0.0   ;;  %v612_v2 = vld [vmem:[#allocation7] sm:$0xff]  ;;  %vm3329_vm0 = vmmov 0   ;;  %v611_v3 = vld [vmem:[%s493_s25] sm:$0xff]  ;;  %vm614_vm1 = vcmask 130048  }
  0x79   : > { %2813 = vmatprep.subr.mxu0 %v3328_v1  ;;  %2817 = vmatprep.mubr.msk.f32.mxu0 %vm3329_vm0, %v3328_v1  ;;  %v688_v4 = vld [vmem:[#allocation9] sm:$0xff]  ;;  %vm690_vm2 = vcmask 261120  }
  0x7a   : > { %2814 = vmatpush3.msra.mxu0 %v613_v0 }
  0x7b   : > { %2815 = vmatprep.subr.mxu0 %v3328_v1 }
  0x7c   : > { %2816 = vmatpush3.msra.mxu0 %v612_v2 }
  0x7d   : > { %2818 = vmatmul.mubr.msk.f32.vlgmr.msra.gmra.mxu0 %vm614_vm1, %v611_v3 }
 0x13d   : > { %v684_v5 = vpop.f32.mrf.mxu0 }
 0x13e   : > { %v689_v6 = vadd.f32 %v688_v4, %v684_v5 }
 0x13f   : > { %v2819_v7 = vpop.f32.mrf.mxu0 }
 0x140   : > { %691 = vst.msk [vmem:[#allocation2] sm:$0xff] %vm690_vm2, %v689_v6 }
 0x141 PF: > { %v697_v8 = vld [vmem:[%s3589_s14 + $0x18] sm:$0xff]  ;;  %v3330_v9 = vmov 0.0   ;;  %v696_v10 = vld [vmem:[%s3589_s14 + $0x10] sm:$0xff]  ;;  %vm3331_vm3 = vmmov 0   ;;  %v695_v11 = vld [vmem:[%s3589_s14 + $0x8] sm:$0xff]  ;;  %vm705_vm4 = vcmask 261120  }
 0x142   : > { %2820 = vmatprep.subr.mxu1 %v3330_v9  ;;  %2828 = vmatprep.mubr.msk.f32.mxu1 %vm3331_vm3, %v3330_v9  ;;  %v694_v12 = vld [vmem:[%s3589_s14] sm:$0xff]  ;;  %s3332_s3 = smov 116   ;;  %s3333_s4 = smov 124   ;;  %vm796_vm5 = vcmask 31744   ;;  %vm1403_vm6 = vcmask 64512   ;;  %vm2154_vm7 = vcmask 97280  }
 0x143   : > { %2821 = vmatpush3.msra.mxu1 %v697_v8  ;;  %2841 = vmatprep.subr.mxu0 %v3330_v9  ;;  %v2711_v14 = vld [vmem:[%s599_s17] ss:$0 sm:$0xff]  ;;  %s3334_s22 = smov 112   ;;  %s3335_s23 = smov 120   ;;  %vm2156_vm8 = vcmask 130048   ;;  %vm2158_vm9 = vcmask 162816  }
 0x144   : > { %2822 = vmatprep.subr.mxu1 %v3330_v9  ;;  %2843 = vmatprep.mubr.msk.f32.mxu0 %vm3331_vm3, %v3330_v9  ;;  %s3336_s19 = smov 104   ;;  %s3337_s12 = smov 108   ;;  %vm2160_vm10 = vcmask 195584   ;;  %vm2162_vm11 = vcmask 228352   ;;  %vm2373_vm13 = vcmask 523264  }
 0x145   : > { %2823 = vmatpush3.msra.mxu1 %v696_v10  ;;  %s3338_s25 = smov 96   ;;  %s3339_s15 = smov 100  }
 0x146   : > { %2824 = vmatprep.subr.mxu1 %v3330_v9  ;;  %s3340_s14 = smov 64   ;;  %s3341_s29 = smov 4  }
 0x147   : > { %2825 = vmatpush3.msra.mxu1 %v695_v11  ;;  %v3635_v13 = vld [vmem:[#allocation2] sm:$0xff]  ;;  %s3342_s17 = smov 8   ;;  %s3343_s11 = smov 12  }
 0x148   : > { %2826 = vmatprep.subr.mxu1 %v3330_v9  ;;  %s3344_s21 = smov 16   ;;  %s3345_s0 = smov 20  }
 0x149   : > { %2827 = vmatpush3.msra.mxu1 %v694_v12  ;;  %s3347_s2 = smov 28   ;;  %p2743_p2 = scmp.ne.s32.totalorder %s3304_s24, 1 }
 0x14a   : > { %2829 = vmatmul.mubr.msk.f32.vlgmr.msra.gmra.mxu1 %vm705_vm4, %v3635_v13  ;;  %2831 = vmatprep.subr.mxu1 %v3330_v9 }
 0x14b   : > { %2833 = vmatprep.mubr.msk.f32.mxu1 %vm3331_vm3, %v3330_v9 }
 0x20a   : > { %v775_v15 = vpop.f32.mrf.mxu1 }
 0x20b   : > { %v3648_v16 = vadd.f32 %v2711_v14, %v775_v15 }
 0x20c   : > { %v2830_v17 = vpop.f32.mrf.mxu1 }
 0x20d   : > { %784 = vrot.lane.b32.xlu1 %v3648_v16, %s3332_s3  ;;  %780 = vrot.lane.b32.xlu0 %v3648_v16, %s3333_s4  ;;  %s3844_s3 = sld [smem:[#allocation10 + %s3304_s24]] }
 0x20e   : > { %s3996_s24 = sld [smem:[#allocation32_spill]] (!%p2743_p2) }
 0x211   : > { %786 = vrot.lane.b32.xlu1 %v3648_v16, %s3334_s22  ;;  %782 = vrot.lane.b32.xlu0 %v3648_v16, %s3335_s23 }
 0x215   : > { %790 = vrot.lane.b32.xlu1 %v3648_v16, %s3336_s19  ;;  %788 = vrot.lane.b32.xlu0 %v3648_v16, %s3337_s12 }
 0x219   : > { %794 = vrot.lane.b32.xlu1 %v3648_v16, %s3338_s25  ;;  %792 = vrot.lane.b32.xlu0 %v3648_v16, %s3339_s15 }
 0x27f   : > { %v3658_v18 = vpop.permute.xlu1 %784  ;;  %v3660_v19 = vpop.permute.xlu0 %780 }
 0x280   : > { %871 = vrot.lane.b32.xlu0 %v3660_v19, %s3338_s25 }
 0x283   : > { %v3663_v20 = vpop.permute.xlu1 %786  ;;  %v3665_v21 = vpop.permute.xlu0 %782 }
 0x284   : > { %1023 = vrot.lane.b32.xlu0 %v3658_v18, %s3338_s25  ;;  %947 = vrot.lane.b32.xlu1 %v3665_v21, %s3338_s25 }
 0x287   : > { %v3669_v22 = vpop.permute.xlu1 %790  ;;  %v3671_v23 = vpop.permute.xlu0 %788 }
 0x288   : > { %1099 = vrot.lane.b32.xlu1 %v3663_v20, %s3338_s25  ;;  %1175 = vrot.lane.b32.xlu0 %v3671_v23, %s3338_s25 }
 0x28b   : > { %v795_v24 = vpop.permute.xlu1 %794  ;;  %v3675_v25 = vpop.permute.xlu0 %792 }
 0x28c   : > { %2832 = vmatpush3.xpose.msk.msra.mxu1 %vm796_vm5, %v795_v24  ;;  %1251 = vrot.lane.b32.xlu1 %v3669_v22, %s3338_s25 }
 0x28d   : > { %1327 = vrot.lane.b32.xlu0 %v3675_v25, %s3338_s25  ;;  %2836 = vmatprep.subr.mxu1 %v3330_v9 }
 0x28f   : > { %2834 = vmatmul.mubr.msk.f32.vlgmr.msra.gmra.mxu1 %vm796_vm5, %v3648_v16 }
 0x290   : > { %2838 = vmatprep.mubr.msk.f32.mxu1 %vm3331_vm3, %v3330_v9 }
 0x2f2   : > { %v872_v26 = vpop.permute.xlu0 %871 }
 0x2f3   : > { %2837 = vmatpush3.xpose.msk.msra.mxu1 %vm796_vm5, %v872_v26 }
 0x2f4   : > { %2846 = vmatprep.subr.mxu1 %v3330_v9 }
 0x2f6   : > { %v948_v27 = vpop.permute.xlu1 %947  ;;  %2839 = vmatmul.mubr.msk.f32.vlgmr.msra.gmra.mxu1 %vm796_vm5, %v3660_v19  ;;  %v1024_v28 = vpop.permute.xlu0 %1023 }
 0x2f7   : > { %2842 = vmatpush3.xpose.msk.msra.mxu0 %vm796_vm5, %v948_v27  ;;  %2847 = vmatpush3.xpose.msk.msra.mxu1 %vm796_vm5, %v1024_v28 }
 0x2f8   : > { %2848 = vmatprep.mubr.msk.f32.mxu1 %vm3331_vm3, %v3330_v9  ;;  %2851 = vmatprep.subr.mxu0 %v3330_v9 }
 0x2f9   : > { %2856 = vmatprep.subr.mxu1 %v3330_v9 }
 0x2fa   : > { %2844 = vmatmul.mubr.msk.f32.vlgmr.msra.gmra.mxu0 %vm796_vm5, %v3665_v21  ;;  %v1100_v29 = vpop.permute.xlu1 %1099  ;;  %2849 = vmatmul.mubr.msk.f32.vlgmr.msra.gmra.mxu1 %vm796_vm5, %v3658_v18  ;;  %v1176_v30 = vpop.permute.xlu0 %1175 }
 0x2fb   : > { %2852 = vmatpush3.xpose.msk.msra.mxu0 %vm796_vm5, %v1100_v29  ;;  %2857 = vmatpush3.xpose.msk.msra.mxu1 %vm796_vm5, %v1176_v30 }
 0x2fc   : > { %2853 = vmatprep.mubr.msk.f32.mxu0 %vm3331_vm3, %v3330_v9  ;;  %2858 = vmatprep.mubr.msk.f32.mxu1 %vm3331_vm3, %v3330_v9 }
 0x2fd   : > { %2861 = vmatprep.subr.mxu0 %v3330_v9  ;;  %2866 = vmatprep.subr.mxu1 %v3330_v9 }
 0x2fe   : > { %2854 = vmatmul.mubr.msk.f32.vlgmr.msra.gmra.mxu0 %vm796_vm5, %v3663_v20  ;;  %v1252_v31 = vpop.permute.xlu1 %1251  ;;  %2859 = vmatmul.mubr.msk.f32.vlgmr.msra.gmra.mxu1 %vm796_vm5, %v3671_v23 }
 0x2ff   : > { %v1328_v32 = vpop.permute.xlu0 %1327  ;;  %2862 = vmatpush3.xpose.msk.msra.mxu0 %vm796_vm5, %v1252_v31  ;;  %2863 = vmatprep.mubr.msk.f32.mxu0 %vm3331_vm3, %v3330_v9 }
 0x300   : > { %2867 = vmatpush3.xpose.msk.msra.mxu1 %vm796_vm5, %v1328_v32  ;;  %2868 = vmatprep.mubr.msk.f32.mxu1 %vm3331_vm3, %v3330_v9 }
 0x301   : > { %2871 = vmatprep.subr.mxu0 %v3330_v9  ;;  %2876 = vmatprep.subr.mxu1 %v3330_v9 }
 0x302   : > { %2864 = vmatmul.mubr.msk.f32.vlgmr.msra.gmra.mxu0 %vm796_vm5, %v3669_v22 }
 0x303   : > { %2869 = vmatmul.mubr.msk.f32.vlgmr.msra.gmra.mxu1 %vm796_vm5, %v3675_v25  ;;  %2873 = vmatprep.mubr.msk.f32.mxu0 %vm3331_vm3, %v3330_v9 }
 0x304   : > { %2878 = vmatprep.mubr.msk.f32.mxu1 %vm3331_vm3, %v3330_v9 }
 0x34f   : > { %v867_v33 = vpop.f32.mrf.mxu1 }
 0x350   : > { %v1404_v34 = vsel %vm1403_vm6, %v867_v33, -inf }
 0x351   : > { %1405 = vmax.xlane.f32.xlu1 %v1404_v34  ;;  %v2835_v35 = vpop.f32.mrf.mxu1 }
 0x3b6   : > { %v943_v36 = vpop.f32.mrf.mxu1 }
 0x3b7   : > { %v1407_v37 = vsel %vm1403_vm6, %v943_v36, -inf }
 0x3b8   : > { %1408 = vmax.xlane.f32.xlu0 %v1407_v37  ;;  %v2840_v38 = vpop.f32.mrf.mxu1 }
 0x3ba   : > { %v1019_v39 = vpop.f32.mrf.mxu0  ;;  %v1095_v40 = vpop.f32.mrf.mxu1 }
 0x3bb   : > { %v1410_v41 = vsel %vm1403_vm6, %v1019_v39, -inf  ;;  %v1413_v42 = vsel %vm1403_vm6, %v1095_v40, -inf }
 0x3bc   : > { %v2845_v43 = vpop.f32.mrf.mxu0  ;;  %1411 = vmax.xlane.f32.xlu0 %v1410_v41  ;;  %1414 = vmax.xlane.f32.xlu1 %v1413_v42  ;;  %v2850_v44 = vpop.f32.mrf.mxu1 }
 0x3be   : > { %v1171_v45 = vpop.f32.mrf.mxu0  ;;  %v1247_v46 = vpop.f32.mrf.mxu1 }
 0x3bf   : > { %v1416_v47 = vsel %vm1403_vm6, %v1171_v45, -inf  ;;  %v1419_v48 = vsel %vm1403_vm6, %v1247_v46, -inf }
 0x3c0   : > { %v2855_v49 = vpop.f32.mrf.mxu0  ;;  %1417 = vmax.xlane.f32.xlu0 %v1416_v47  ;;  %1420 = vmax.xlane.f32.xlu1 %v1419_v48  ;;  %v2860_v50 = vpop.f32.mrf.mxu1 }
 0x3c2   : > { %v1323_v51 = vpop.f32.mrf.mxu0 }
 0x3c3   : > { %v1399_v52 = vpop.f32.mrf.mxu1  ;;  %v1422_v53 = vsel %vm1403_vm6, %v1323_v51, -inf }
 0x3c4   : > { %v2865_v54 = vpop.f32.mrf.mxu0  ;;  %1423 = vmax.xlane.f32.xlu0 %v1422_v53  ;;  %v1425_v55 = vsel %vm1403_vm6, %v1399_v52, -inf }
 0x3c5   : > { %1426 = vmax.xlane.f32.xlu1 %v1425_v55  ;;  %v2870_v56 = vpop.f32.mrf.mxu1 }
 0x3d6   : > { %1592 = vrot.lane.b32.xlu1 %v3660_v19, %s3340_s14 }
 0x3da   : > { %1668 = vrot.lane.b32.xlu1 %v3665_v21, %s3340_s14  ;;  %1516 = vrot.lane.b32.xlu0 %v3648_v16, %s3340_s14  ;;  %v1406_v57 = vpop.xlane.xlu1 %1405 }
 0x3db   : > { %v1428_v58 = vsub.f32 %v867_v33, %v1406_v57 }
 0x3dd   : > { %v1436_v59 = vmul.f32 1.442695, %v1428_v58 }
 0x3de   : > { %1820 = vrot.lane.b32.xlu1 %v3663_v20, %s3340_s14  ;;  %1744 = vrot.lane.b32.xlu0 %v3658_v18, %s3340_s14 }
 0x3df   : > { %3083 = vpow2.f32 %v1436_v59 }
 0x3ec   : > { %v3745_v60 = vpop.eup %3083 }
 0x3ed   : > { %v1452_v61 = vsel %vm1403_vm6, %v3745_v60, 0.0 }
 0x3fd   : > { %1453 = vadd.xlane.f32.xlu0 %v1452_v61 }
 0x441   : > { %v1409_v62 = vpop.xlane.xlu0 %1408 }
 0x442   : > { %v1429_v63 = vsub.f32 %v943_v36, %v1409_v62 }
 0x444   : > { %v1438_v0 = vmul.f32 1.442695, %v1429_v63 }
 0x445   : > { %v1412_v1 = vpop.xlane.xlu0 %1411  ;;  %v1415_v2 = vpop.xlane.xlu1 %1414 }
 0x446   : > { %3085 = vpow2.f32 %v1438_v0  ;;  %v1430_v3 = vsub.f32 %v1019_v39, %v1412_v1  ;;  %v1431_v4 = vsub.f32 %v1095_v40, %v1415_v2 }
 0x448   : > { %v1440_v5 = vmul.f32 1.442695, %v1430_v3  ;;  %v1442_v6 = vmul.f32 1.442695, %v1431_v4 }
 0x449   : > { %v1418_v7 = vpop.xlane.xlu0 %1417  ;;  %v1421_v8 = vpop.xlane.xlu1 %1420 }
 0x44a   : > { %3087 = vpow2.f32 %v1440_v5  ;;  %v1432_v10 = vsub.f32 %v1171_v45, %v1418_v7  ;;  %v1433_v11 = vsub.f32 %v1247_v46, %v1421_v8 }
 0x44b   : > { %3089 = vpow2.f32 %v1442_v6 }
 0x44c   : > { %v1444_v12 = vmul.f32 1.442695, %v1432_v10  ;;  %v1446_v14 = vmul.f32 1.442695, %v1433_v11 }
 0x44d   : > { %v1424_v15 = vpop.xlane.xlu0 %1423 }
 0x44e   : > { %3091 = vpow2.f32 %v1444_v12  ;;  %v1434_v16 = vsub.f32 %v1323_v51, %v1424_v15  ;;  %v1427_v17 = vpop.xlane.xlu1 %1426 }
 0x44f   : > { %3093 = vpow2.f32 %v1446_v14  ;;  %v1435_v18 = vsub.f32 %v1399_v52, %v1427_v17 }
 0x450   : > { %v1448_v19 = vmul.f32 1.442695, %v1434_v16 }
 0x451   : > { %v1450_v20 = vmul.f32 1.442695, %v1435_v18  ;;  %v1517_v21 = vpop.permute.xlu0 %1516 }
 0x452   : > { %3095 = vpow2.f32 %v1448_v19  ;;  %v1593_v24 = vpop.permute.xlu1 %1592  ;;  %2872 = vmatpush3.msra.mxu0 %v1517_v21 }
 0x453   : > { %v3749_v26 = vpop.eup %3085  ;;  %3097 = vpow2.f32 %v1450_v20  ;;  %2877 = vmatpush3.msra.mxu1 %v1593_v24  ;;  %2881 = vmatprep.subr.mxu0 %v3330_v9 }
 0x454   : > { %v1455_v27 = vsel %vm1403_vm6, %v3749_v26, 0.0  ;;  %2886 = vmatprep.subr.mxu1 %v3330_v9 }
 0x455   : > { %1456 = vadd.xlane.f32.xlu1 %v1455_v27  ;;  %v1745_v40 = vpop.permute.xlu0 %1744 }
 0x456   : > { %v1669_v47 = vpop.permute.xlu1 %1668 }
 0x457   : > { %v3755_v28 = vpop.eup %3087 }
 0x458   : > { %v3757_v29 = vpop.eup %3089  ;;  %v1458_v30 = vsel %vm1403_vm6, %v3755_v28, 0.0 }
 0x459   : > { %1459 = vadd.xlane.f32.xlu0 %v1458_v30  ;;  %v1461_v31 = vsel %vm1403_vm6, %v3757_v29, 0.0 }
 0x45a   : > { %1462 = vadd.xlane.f32.xlu1 %v1461_v31 }
 0x45b   : > { %v3763_v32 = vpop.eup %3091 }
 0x45c   : > { %v3765_v33 = vpop.eup %3093  ;;  %v1464_v34 = vsel %vm1403_vm6, %v3763_v32, 0.0 }
 0x45d   : > { %1465 = vadd.xlane.f32.xlu0 %v1464_v34  ;;  %v1467_v35 = vsel %vm1403_vm6, %v3765_v33, 0.0  ;;  %v2167_v34 = vld [vmem:[%s3594_s18 + $0x18] sm:$0xff] }
 0x45e   : > { %1468 = vadd.xlane.f32.xlu1 %v1467_v35  ;;  %v2166_v35 = vld [vmem:[%s3594_s18 + $0x10] sm:$0xff] }
 0x45f   : > { %v3771_v36 = vpop.eup %3095 }
 0x460   : > { %v3773_v37 = vpop.eup %3097  ;;  %v1470_v38 = vsel %vm1403_vm6, %v3771_v36, 0.0 }
 0x461   : > { %1471 = vadd.xlane.f32.xlu0 %v1470_v38  ;;  %v1473_v39 = vsel %vm1403_vm6, %v3773_v37, 0.0  ;;  %v2164_v38 = vld [vmem:[%s3594_s18] sm:$0xff] }
 0x462   : > { %1474 = vadd.xlane.f32.xlu1 %v1473_v39 }
 0x473   : > { %1972 = vrot.lane.b32.xlu1 %v3669_v22, %s3340_s14  ;;  %v1821_v22 = vpop.permute.xlu1 %1820 }
 0x477   : > { %1896 = vrot.lane.b32.xlu0 %v3671_v23, %s3340_s14 }
 0x47b   : > { %2048 = vrot.lane.b32.xlu0 %v3675_v25, %s3340_s14 }
 0x486   : > { %v1454_v41 = vpop.xlane.xlu0 %1453 }
 0x487   : > { %3099 = vrcp.f32 %v1454_v41 }
 0x494   : > { %v3100_v42 = vpop.eup %3099 }
 0x495   : > { %v1484_v43 = vmul.f32 %v3100_v42, %v1454_v41 }
 0x497   : > { %v1492_v44 = vsub.f32 2.0, %v1484_v43 }
 0x499   : > { %v1500_v45 = vmul.f32 %v3100_v42, %v1492_v44 }
 0x49b   : > { %v1508_v46 = vmul.f32 %v3745_v60, %v1500_v45 }
 0x49d   : > { %2874 = vmatmul.mubr.msk.f32.vlgmr.msra.gmra.mxu0 %vm1403_vm6, %v1508_v46 }
 0x49e   : > { %2882 = vmatpush3.msra.mxu0 %v1669_v47  ;;  %2883 = vmatprep.mubr.msk.f32.mxu0 %vm3331_vm3, %v3330_v9 }
 0x49f   : > { %2891 = vmatprep.subr.mxu0 %v3330_v9 }
 0x4de   : > { %v1457_v23 = vpop.xlane.xlu1 %1456 }
 0x4df   : > { %3101 = vrcp.f32 %v1457_v23 }
 0x4e2   : > { %v1460_v25 = vpop.xlane.xlu0 %1459 }
 0x4e3   : > { %3103 = vrcp.f32 %v1460_v25  ;;  %v1463_v48 = vpop.xlane.xlu1 %1462 }
 0x4e4   : > { %3105 = vrcp.f32 %v1463_v48 }
 0x4e6   : > { %v1466_v49 = vpop.xlane.xlu0 %1465 }
 0x4e7   : > { %3107 = vrcp.f32 %v1466_v49  ;;  %v1469_v50 = vpop.xlane.xlu1 %1468 }
 0x4e8   : > { %3109 = vrcp.f32 %v1469_v50 }
 0x4ea   : > { %v1472_v51 = vpop.xlane.xlu0 %1471 }
 0x4eb   : > { %3111 = vrcp.f32 %v1472_v51  ;;  %v1475_v52 = vpop.xlane.xlu1 %1474 }
 0x4ec   : > { %v3102_v53 = vpop.eup %3101  ;;  %3113 = vrcp.f32 %v1475_v52 }
 0x4ed   : > { %v1485_v54 = vmul.f32 %v3102_v53, %v1457_v23 }
 0x4ee   : > { %v1897_v12 = vpop.permute.xlu0 %1896 }
 0x4ef   : > { %v1493_v55 = vsub.f32 2.0, %v1485_v54  ;;  %v1973_v27 = vpop.permute.xlu1 %1972 }
 0x4f0   : > { %v3104_v56 = vpop.eup %3103 }
 0x4f1   : > { %v3106_v57 = vpop.eup %3105  ;;  %v1501_v58 = vmul.f32 %v3102_v53, %v1493_v55  ;;  %v1486_v59 = vmul.f32 %v3104_v56, %v1460_v25 }
 0x4f2   : > { %v1487_v60 = vmul.f32 %v3106_v57, %v1463_v48 }
 0x4f3   : > { %v1509_v61 = vmul.f32 %v3749_v26, %v1501_v58  ;;  %v1494_v62 = vsub.f32 2.0, %v1486_v59 }
 0x4f4   : > { %v3108_v63 = vpop.eup %3107  ;;  %v1495_v0 = vsub.f32 2.0, %v1487_v60 }
 0x4f5   : > { %v3110_v1 = vpop.eup %3109  ;;  %v1502_v2 = vmul.f32 %v3104_v56, %v1494_v62  ;;  %v1488_v3 = vmul.f32 %v3108_v63, %v1466_v49  ;;  %2879 = vmatmul.mubr.msk.f32.vlgmr.msra.gmra.mxu1 %vm1403_vm6, %v1509_v61 }
 0x4f6   : > { %v1503_v4 = vmul.f32 %v3106_v57, %v1495_v0  ;;  %v1489_v5 = vmul.f32 %v3110_v1, %v1469_v50  ;;  %2887 = vmatpush3.msra.mxu1 %v1745_v40  ;;  %2888 = vmatprep.mubr.msk.f32.mxu1 %vm3331_vm3, %v3330_v9  ;;  %v2251_v0 = vld [vmem:[%s3599_s10 + $0x10] sm:$0xff] }
 0x4f7   : > { %v1510_v6 = vmul.f32 %v3755_v28, %v1502_v2  ;;  %v1496_v7 = vsub.f32 2.0, %v1488_v3  ;;  %2896 = vmatprep.subr.mxu1 %v3330_v9  ;;  %v2249_v2 = vld [vmem:[%s3599_s10] sm:$0xff] }
 0x4f8   : > { %v3112_v8 = vpop.eup %3111  ;;  %v1511_v10 = vmul.f32 %v3757_v29, %v1503_v4  ;;  %v1497_v11 = vsub.f32 2.0, %v1489_v5  ;;  %v2049_v29 = vpop.permute.xlu0 %2048  ;;  %v2737_v3 = vld [vmem:[%s3614_s13] ss:$0 sm:$0xff]  ;;  %v2246_v5 = vstv %s3844_s3 }
 0x4f9   : > { %v3114_v14 = vpop.eup %3113  ;;  %v1504_v15 = vmul.f32 %v3108_v63, %v1496_v7  ;;  %v1490_v16 = vmul.f32 %v3112_v8, %v1472_v51  ;;  %2884 = vmatmul.mubr.msk.f32.vlgmr.msra.gmra.mxu0 %vm1403_vm6, %v1510_v6  ;;  %v2252_v63 = vld [vmem:[%s3599_s10 + $0x18] sm:$0xff] }
 0x4fa   : > { %v1505_v17 = vmul.f32 %v3110_v1, %v1497_v11  ;;  %v1491_v18 = vmul.f32 %v3114_v14, %v1475_v52  ;;  %2889 = vmatmul.mubr.msk.f32.vlgmr.msra.gmra.mxu1 %vm1403_vm6, %v1511_v10  ;;  %2892 = vmatpush3.msra.mxu0 %v1821_v22  ;;  %v2250_v1 = vld [vmem:[%s3599_s10 + $0x8] sm:$0xff]  ;;  %v2367_v11 = vld [vmem:[%s3604_s27 + $0x38] sm:$0xff] }
 0x4fb   : > { %v1512_v19 = vmul.f32 %v3763_v32, %v1504_v15  ;;  %v1498_v20 = vsub.f32 2.0, %v1490_v16  ;;  %2897 = vmatpush3.msra.mxu1 %v1897_v12  ;;  %2893 = vmatprep.mubr.msk.f32.mxu0 %vm3331_vm3, %v3330_v9  ;;  %v2366_v12 = vld [vmem:[%s3604_s27 + $0x30] sm:$0xff]  ;;  %v2363_v15 = vld [vmem:[%s3604_s27 + $0x18] sm:$0xff] }
 0x4fc   : > { %v1513_v21 = vmul.f32 %v3765_v33, %v1505_v17  ;;  %v1499_v24 = vsub.f32 2.0, %v1491_v18  ;;  %2898 = vmatprep.mubr.msk.f32.mxu1 %vm3331_vm3, %v3330_v9  ;;  %2901 = vmatprep.subr.mxu0 %v3330_v9  ;;  %v2362_v16 = vld [vmem:[%s3604_s27 + $0x10] sm:$0xff]  ;;  %v2361_v17 = vld [vmem:[%s3604_s27 + $0x8] sm:$0xff]  ;;  %v2360_v18 = vld [vmem:[%s3604_s27] sm:$0xff] }
 0x4fd   : > { %v1506_v26 = vmul.f32 %v3112_v8, %v1498_v20  ;;  %2906 = vmatprep.subr.mxu1 %v3330_v9  ;;  %2894 = vmatmul.mubr.msk.f32.vlgmr.msra.gmra.mxu0 %vm1403_vm6, %v1512_v19  ;;  %v2739_v19 = vld [vmem:[%s606_s26] ss:$0 sm:$0xff] }
 0x4fe   : > { %v1507_v28 = vmul.f32 %v3114_v14, %v1499_v24  ;;  %2899 = vmatmul.mubr.msk.f32.vlgmr.msra.gmra.mxu1 %vm1403_vm6, %v1513_v21  ;;  %2902 = vmatpush3.msra.mxu0 %v1973_v27  ;;  %v2365_v14 = vld [vmem:[%s3604_s27 + $0x28] sm:$0xff] }
 0x4ff   : > { %v1514_v30 = vmul.f32 %v3771_v36, %v1506_v26  ;;  %2907 = vmatpush3.msra.mxu1 %v2049_v29  ;;  %2903 = vmatprep.mubr.msk.f32.mxu0 %vm3331_vm3, %v3330_v9  ;;  %v2165_v36 = vld [vmem:[%s3594_s18 + $0x8] sm:$0xff]  ;;  %s3346_s18 = smov 24  }
 0x500   : > { %v1515_v31 = vmul.f32 %v3773_v37, %v1507_v28  ;;  %2908 = vmatprep.mubr.msk.f32.mxu1 %vm3331_vm3, %v3330_v9  ;;  %2911 = vmatprep.subr.mxu0 %v3330_v9 }
 0x501   : > { %2904 = vmatmul.mubr.msk.f32.vlgmr.msra.gmra.mxu0 %vm1403_vm6, %v1514_v30  ;;  %2922 = vmatprep.subr.mxu1 %v3330_v9 }
 0x502   : > { %2909 = vmatmul.mubr.msk.f32.vlgmr.msra.gmra.mxu1 %vm1403_vm6, %v1515_v31  ;;  %2919 = vmatprep.mubr.msk.f32.mxu0 %vm3331_vm3, %v3330_v9 }
 0x503   : > { %2930 = vmatprep.mubr.msk.f32.mxu1 %vm3331_vm3, %v3330_v9  ;;  %2912 = vmatpush3.msra.mxu0 %v2167_v34 }
 0x504   : > { %2913 = vmatprep.subr.mxu0 %v3330_v9  ;;  %2923 = vmatpush3.msra.mxu1 %v2252_v63 }
 0x505   : > { %2914 = vmatpush3.msra.mxu0 %v2166_v35  ;;  %2924 = vmatprep.subr.mxu1 %v3330_v9 }
 0x506   : > { %2915 = vmatprep.subr.mxu0 %v3330_v9  ;;  %2925 = vmatpush3.msra.mxu1 %v2251_v0 }
 0x507   : > { %2916 = vmatpush3.msra.mxu0 %v2165_v36  ;;  %2926 = vmatprep.subr.mxu1 %v3330_v9 }
 0x508   : > { %2917 = vmatprep.subr.mxu0 %v3330_v9  ;;  %2927 = vmatpush3.msra.mxu1 %v2250_v1 }
 0x509   : > { %2918 = vmatpush3.msra.mxu0 %v2164_v38  ;;  %2928 = vmatprep.subr.mxu1 %v3330_v9 }
 0x50a   : > { %2933 = vmatprep.subr.mxu0 %v3330_v9  ;;  %2929 = vmatpush3.msra.mxu1 %v2249_v2 }
 0x55d   : > { %v1588_v32 = vpop.f32.mrf.mxu0 }
 0x55f   : > { %v2875_v33 = vpop.f32.mrf.mxu0 }
 0x5b5   : > { %v1664_v37 = vpop.f32.mrf.mxu1 }
 0x5b6   : > { %2125 = vrot.lane.b32.xlu1 %v1664_v37, %s3341_s29 }
 0x5b7   : > { %v2880_v39 = vpop.f32.mrf.mxu1 }
 0x5b9   : > { %v1740_v40 = vpop.f32.mrf.mxu0 }
 0x5ba   : > { %v1816_v41 = vpop.f32.mrf.mxu1  ;;  %2129 = vrot.lane.b32.xlu0 %v1740_v40, %s3342_s17 }
 0x5bb   : > { %2133 = vrot.lane.b32.xlu1 %v1816_v41, %s3343_s11  ;;  %v2885_v42 = vpop.f32.mrf.mxu0 }
 0x5bc   : > { %v2890_v43 = vpop.f32.mrf.mxu1 }
 0x5bd   : > { %v1892_v44 = vpop.f32.mrf.mxu0 }
 0x5be   : > { %v1968_v45 = vpop.f32.mrf.mxu1  ;;  %2137 = vrot.lane.b32.xlu0 %v1892_v44, %s3344_s21 }
 0x5bf   : > { %2141 = vrot.lane.b32.xlu1 %v1968_v45, %s3345_s0  ;;  %v2895_v46 = vpop.f32.mrf.mxu0 }
 0x5c0   : > { %v2900_v47 = vpop.f32.mrf.mxu1 }
 0x5c1   : > { %v2044_v22 = vpop.f32.mrf.mxu0 }
 0x5c2   : > { %v2120_v23 = vpop.f32.mrf.mxu1  ;;  %2145 = vrot.lane.b32.xlu0 %v2044_v22, %s3346_s18 }
 0x5c3   : > { %2149 = vrot.lane.b32.xlu1 %v2120_v23, %s3347_s2  ;;  %v2905_v25 = vpop.f32.mrf.mxu0 }
 0x5c4   : > { %v2910_v48 = vpop.f32.mrf.mxu1  ;;  %v2741_v25 = vld [vmem:[%s3614_s13 + $0x1] ss:$0 sm:$0xff]  ;;  %s3997_s13 = smov (!%p2743_p2), %s3996_s24 }
 0x628   : > { %v2126_v49 = vpop.permute.xlu1 %2125 }
 0x629   : > { %v2152_v50 = vsel %vm796_vm5, %v1588_v32, %v2126_v49 }
 0x62c   : > { %v2130_v51 = vpop.permute.xlu0 %2129 }
 0x62d   : > { %v2153_v52 = vsel %vm1403_vm6, %v2152_v50, %v2130_v51  ;;  %v2134_v53 = vpop.permute.xlu1 %2133 }
 0x62e   : > { %v2155_v54 = vsel %vm2154_vm7, %v2153_v52, %v2134_v53 }
 0x630   : > { %v2138_v55 = vpop.permute.xlu0 %2137 }
 0x631   : > { %v2157_v56 = vsel %vm2156_vm8, %v2155_v54, %v2138_v55  ;;  %v2142_v57 = vpop.permute.xlu1 %2141 }
 0x632   : > { %v2159_v58 = vsel %vm2158_vm9, %v2157_v56, %v2142_v57 }
 0x634   : > { %v2146_v59 = vpop.permute.xlu0 %2145 }
 0x635   : > { %v2161_v60 = vsel %vm2160_vm10, %v2159_v58, %v2146_v59  ;;  %v2150_v61 = vpop.permute.xlu1 %2149 }
 0x636   : > { %v2163_v62 = vsel %vm2162_vm11, %v2161_v60, %v2150_v61 }
 0x637   : > { %2920 = vmatmul.mubr.msk.f32.vlgmr.msra.gmra.mxu0 %vm705_vm4, %v2163_v62 }
 0x638   : > { %2949 = vmatprep.mubr.msk.f32.mxu0 %vm3331_vm3, %v3330_v9  ;;  %2934 = vmatpush3.msra.mxu0 %v2367_v11 }
 0x639   : > { %2935 = vmatprep.subr.mxu0 %v3330_v9 }
 0x63a   : > { %2936 = vmatpush3.msra.mxu0 %v2366_v12 }
 0x63b   : > { %2937 = vmatprep.subr.mxu0 %v3330_v9 }
 0x63c   : > { %2938 = vmatpush3.msra.mxu0 %v2365_v14 }
 0x63d   : > { %2939 = vmatprep.subr.mxu0 %v3330_v9 }
 0x6f7   : > { %v2242_v4 = vpop.f32.mrf.mxu0 }
 0x6f8   : > { %v2243_v6 = vadd.f32 %v2737_v3, %v2242_v4 }
 0x6f9   : > { %v2921_v7 = vpop.f32.mrf.mxu0 }
 0x6fa   : > { %v2247_v8 = vmul.f32 %v2246_v5, %v2243_v6 }
 0x6fc   : > { %v3851_v10 = vadd.f32 %v2247_v8, %v3635_v13  ;;  %v2364_v13 = vld [vmem:[%s3604_s27 + $0x20] sm:$0xff] }
 0x6fd   : > { %2940 = vmatpush3.msra.mxu0 %v2364_v13 }
 0x6fe   : > { %2931 = vmatmul.mubr.msk.f32.vlgmr.msra.gmra.mxu1 %vm705_vm4, %v3851_v10  ;;  %2941 = vmatprep.subr.mxu0 %v3330_v9 }
 0x6ff   : > { %2942 = vmatpush3.msra.mxu0 %v2363_v15 }
 0x700   : > { %2943 = vmatprep.subr.mxu0 %v3330_v9 }
 0x701   : > { %2944 = vmatpush3.msra.mxu0 %v2362_v16 }
 0x702   : > { %2945 = vmatprep.subr.mxu0 %v3330_v9 }
 0x703   : > { %2946 = vmatpush3.msra.mxu0 %v2361_v17 }
 0x704   : > { %2947 = vmatprep.subr.mxu0 %v3330_v9 }
 0x705   : > { %2948 = vmatpush3.msra.mxu0 %v2360_v18 }
 0x7be   : > { %v2329_v20 = vpop.f32.mrf.mxu1 }
 0x7bf   : > { %v2330_v21 = vadd.f32 %v2739_v19, %v2329_v20 }
 0x7c0   : > { %v2932_v24 = vpop.f32.mrf.mxu1 }
 0x7c1   : > { %v2334_v26 = vmul.f32 0.70710677, %v2330_v21  ;;  %v2333_v47 = vmul.f32 0.5, %v2330_v21 }
 0x7c3   : > { %v2335_v27 = vand.u32 2147483647, %v2334_v26  ;;  %vm2355_vm12 = vcmp.ge.f32.partialorder %v2334_v26, 0.0 }
 0x7c5   : > { %v2336_v28 = vmul.f32 0.3275911, %v2335_v27  ;;  %v2349_v30 = vsub.f32 0.0, %v2335_v27 }
 0x7c7   : > { %v2337_v29 = vadd.f32 1.0, %v2336_v28  ;;  %v2350_v31 = vmul.f32 %v2349_v30, %v2335_v27 }
 0x7c9   : > { %3115 = vrcp.f32 %v2337_v29  ;;  %v2351_v34 = vmul.f32 1.442695, %v2350_v31 }
 0x7cb   : > { %3117 = vpow2.f32 %v2351_v34 }
 0x7d6   : > { %v3116_v32 = vpop.eup %3115 }
 0x7d7   : > { %v2340_v33 = vmul.f32 1.0614054, %v3116_v32 }
 0x7d8   : > { %v3118_v42 = vpop.eup %3117 }
 0x7d9   : > { %v2341_v9 = vadd.f32 -1.4531521, %v2340_v33 }
 0x7db   : > { %v2342_v35 = vmul.f32 %v3116_v32, %v2341_v9 }
 0x7dd   : > { %v2343_v36 = vadd.f32 1.4214138, %v2342_v35 }
 0x7df   : > { %v2344_v37 = vmul.f32 %v3116_v32, %v2343_v36 }
 0x7e1   : > { %v2345_v38 = vadd.f32 -0.28449672, %v2344_v37 }
 0x7e3   : > { %v2346_v39 = vmul.f32 %v3116_v32, %v2345_v38 }
 0x7e5   : > { %v2347_v40 = vadd.f32 0.2548296, %v2346_v39 }
 0x7e7   : > { %v2348_v41 = vmul.f32 %v3116_v32, %v2347_v40 }
 0x7e9   : > { %v2353_v43 = vmul.f32 %v3118_v42, %v2348_v41 }
 0x7eb   : > { %v2354_v44 = vsub.f32 1.0, %v2353_v43 }
 0x7ed   : > { %v2356_v45 = vsub.f32 0.0, %v2354_v44 }
 0x7ef   : > { %v2357_v46 = vsel %vm2355_vm12, %v2354_v44, %v2356_v45 }
 0x7f0   : > { %v2358_v22 = vadd.f32 1.0, %v2357_v46 }
 0x7f2   : > { %v2359_v23 = vmul.f32 %v2358_v22, %v2333_v47 }
 0x7f4   : > { %2950 = vmatmul.mubr.msk.f32.vlgmr.msra.gmra.mxu0 %vm2373_vm13, %v2359_v23 }
 0x8b4   : > { %v2443_v48 = vpop.f32.mrf.mxu0 }
 0x8b5   : > { %v2444_v49 = vadd.f32 %v2741_v25, %v2443_v48 }
 0x8b6   : > { %v2951_v50 = vpop.f32.mrf.mxu0 }
 0x8b7   : > { %v2447_v51 = vmul.f32 %v2444_v49, %v2246_v5  ;;  %2453 = sbr.rel (%p2743_p2) target bundleno = 2545 (0x9f1), region = 92 }
 0x8b9   : > { %v2448_v52 = vadd.f32 %v2447_v51, %v3851_v10 }
 0x8bb   : > { %2449 = vst.msk [vmem:[#allocation2] sm:$0xff] %vm705_vm4, %v2448_v52 }
 0x8bc   : > { %v2454_v53 = vsel %vm705_vm4, %v2448_v52, 0.0  ;;  %v2744_v63 = vld [vmem:[%s3996_s24] ss:$0 sm:$0xff]  ;;  %v2745_v1 = vld [vmem:[%s3997_s13 + $0x1] ss:$0 sm:$0xff] }
 0x8bd   : > { %2455 = vadd.xlane.f32.xlu0 %v2454_v53 }
 0x946   : > { %v2456_v54 = vpop.xlane.xlu0 %2455 }
 0x947   : > { %v2458_v55 = vmul.f32 0.03125, %v2456_v54 }
 0x949   : > { %v2459_v56 = vsub.f32 %v2448_v52, %v2458_v55 }
 0x94b   : > { %v2460_v57 = vmul.f32 %v2459_v56, %v2459_v56 }
 0x94d   : > { %v2461_v58 = vsel %vm705_vm4, %v2460_v57, 0.0 }
 0x94e   : > { %2462 = vadd.xlane.f32.xlu0 %v2461_v58 }
 0x9d7   : > { %v2463_v59 = vpop.xlane.xlu0 %2462 }
 0x9d8   : > { %v2464_v60 = vmul.f32 0.03125, %v2463_v59 }
 0x9da   : > { %v2465_v61 = vadd.f32 1e-05, %v2464_v60 }
 0x9dc   : > { %3119 = vrsqrt.f32 %v2465_v61 }
 0x9e9   : > { %v3120_v62 = vpop.eup %3119 }
 0x9ea   : > { %v2467_v0 = vmul.f32 %v3120_v62, %v2459_v56 }
 0x9ec   : > { %v2473_v2 = vmul.f32 %v2744_v63, %v2467_v0 }
 0x9ee   : > { %v2479_v3 = vadd.f32 %v2745_v1, %v2473_v2 }
 0x9f0   : > { %2480 = vst.msk [vmem:[%s3620_s16] sm:$0xff] %vm705_vm4, %v2479_v3 }
 0x9f1 PF: > { %s3998_s23 = sld [smem:[#allocation19_spill]]  ;;  %s2495_s29 = sshll.u32 %s3620_s16, 4  ;;  %s2496_s29 = int_to_ptr.vmem [resolvable:$true] %s2495_s29 }
 0x9f2   : > { %s3999_s15 = sld [smem:[#allocation33_spill]]  ;;  %s2482_s17 = scalar_lea.sflag [#allocation5], %s3564_s30 }
 0x9f3   : > { %s3216_s11 = scalar_lea.vmem %s2496_s29, 128  ;;  %s3348_s21 = smov [#allocation11]  }
 0x9f4   : > { %p3217_p1 = scmp.ne.s32.totalorder %s2496_s29, %s3216_s11  ;;  %s3220_s0 = sshll.u32 %s3348_s21, 4  ;;  %s3221_s0 = int_to_ptr.vmem [resolvable:$false] %s3220_s0 }
 0x9f5   : > { %s3222_s18 = scalar_lea.vmem %s3221_s0, 256  ;;  %p3223_p12 = scmp.lt.s32.totalorder %s2496_s29, %s3221_s0 }
 0x9f6   : > { %p3218_p4 = pnand %p3217_p1, %p3534_p0  ;;  %p3224_p11 = scmp.lt.s32.totalorder %s3222_s18, %s3216_s11 }
 0x9f7   : > { %s2747_s19 = sshll.u32 %s3998_s23, 7 }
 0x9f8   : > { %s2493_s14 = scalar_lea.hbm %s3999_s15, %s2747_s19  ;;  %p3219_p9 = pneg %p3218_p4 }
 0x9f9   : > { %p3225_p13 = por %p3224_p11, %p3223_p12 }
 0x9fb   : > { %p3226_p3 = pnand %p3225_p13, %p3219_p9 }
 0x9fd   : > { %3229 = shalt.err (!%p3226_p3)
}
 0x9fe   : > { %s3230_s2 = scalar_lea.hbm %s2493_s14, 128  ;;  %s3234_s3 = scalar_lea.hbm %s3999_s15, 256 }
 0x9ff   : > { %p3231_p5 = scmp.ne.s32.totalorder %s2493_s14, %s3230_s2  ;;  %p3235_p8 = scmp.lt.s32.totalorder %s2493_s14, %s3999_s15 }
 0xa00   : > { %p3236_p7 = scmp.lt.s32.totalorder %s3234_s3, %s3230_s2 }
 0xa01   : > { %p3232_p10 = pnand %p3231_p5, %p3534_p0 }
 0xa02   : > { %p3237_p2 = por %p3236_p7, %p3235_p8 }
 0xa03   : > { %p3233_p6 = pneg %p3232_p10 }
 0xa05   : > { %p3238_p1 = pnand %p3237_p2, %p3233_p6 }
 0xa07   : > { %3241 = shalt.err (!%p3238_p1)
}
 0xa08   : > { %2966 = dma.vmem_to_hbm [thread:$0]  (%p3534_p0), %s2496_s29, 128, %s2493_s14, %s2482_s17  }
 0xa09 PF: > { %s4000_s27 = sld [smem:[#allocation16_spill]]  ;;  %p2993_p4 = scmp.ge.s32.totalorder %s3320_s28, 2 }
 0xa0a   : > { %s4001_s1 = sld [smem:[#allocation22_spill]] }
 0xa0f   : > { %s2507_s24 = sand.u32 1, %s4000_s27  }
 0xa10   : > { %p4002_p9 = scmp.ne.s32.totalorder %s4001_s1, 0  ;;  %s2508_s26 = scalar_lea.sflag [#allocation5], %s2507_s24 }
 0xa12   : > { %p2983_p12 = pnand %p2993_p4, %p4002_p9 }
 0xa14   : > { %p2984_p11 = pneg %p2983_p12 }
 0xa16   : > { %3287 = dma.done.wait (%p2984_p11), %s2508_s26, 128  }
 0xa17   : > { %3289 = vsyncadd (%p2984_p11), %s2508_s26, 4294967168  ;;  %s30_s28 = sadd.s32 1, %s3320_s28   ;;  %s4003_s21 = sld [smem:[#allocation17_spill]] }
 0xa18   : > { %p27_p13 = scmp.ge.s32.totalorder %s30_s28, 6   ;;  %s4004_s22 = sld [smem:[#allocation18_spill]] }
 0xa19   : > { %s4005_s23 = sld [smem:[#allocation25_spill]] }
 0xa1a   : > { %s4006_s24 = sld [smem:[#allocation20_spill]]  ;;  %29 = sbr.rel (!%p27_p13) target bundleno = 18 (0x12), region = 155 }
 0xa1b   : > { %s4007_s25 = sld [smem:[#allocation21_spill]] }
 0xa1c   : > { %s4008_s26 = sld [smem:[#allocation23_spill]] }
 0xa1d   : > { %s4009_s27 = sld [smem:[#allocation24_spill]] }
 0xa1f   :  { %2513 = vsyncpa [#allocation4], 1 }
 0xa20   :  { %2515 = vsyncpa [#allocation4 + $0x1], 1 }
 0xa21   :  { %2516 = vsyncpa [#allocation8], 1 }
 0xa22   :  { %2517 = vsyncpa [#allocation5], 1 }
 0xa23   :  { %2519 = vsyncpa [#allocation5 + $0x1], 1 }
 0xa24   :  { %2520 = vsyncpa [#allocation6], 1 }
 0xa25   :  { %2522 = vsyncpa [#allocation6 + $0x1], 1 }

</bundles_post_ra>
